<compile_context>
chip_gen: v5e
topology: v5e:2x2
jax: 0.10.0
libtpu: 0.0.40
codegen_flags: <defaults>
</compile_context>

<pallas_src>
import math

import numpy as np
import jax
import jax.numpy as jnp
from jax import lax
from jax.experimental import pallas as pl
from jax.experimental.pallas import tpu as pltpu

ENC_OUT = 512    # ResNet34 final feature channels (Classifier2 in_channel)
CLS_MID = 16     # Classifier2 mid_channel
ATT_IN = 32      # AttentionBlock in_channels
KEY = 16         # key_size
VAL = 16         # value_size
BN_EPS = 1e-5
_PIX_TILE_BYTES = 2 << 20   # per-step pixel tile budget (both slabs); x2 double-buffering


def _pick_chunk(hw, rows_total, target_bytes=_PIX_TILE_BYTES):
    """Largest multiple-of-128 divisor of hw whose (rows_total, chunk) f32 tile fits the
    byte budget; falls back to the full row when hw is not 128-aligned."""
    if hw % 128 != 0:
        return hw
    best = 128
    d = 128
    while d <= hw:
        if hw % d == 0 and d * rows_total * 4 <= target_bytes:
            best = d
        d += 128
    if best == hw and hw % 256 == 0:
        best = hw // 2          # keep >= 2 grid steps so the DMA pipeline double-buffers
    return best


# ---------------------------------------------------------------------------
# Fused kernel: streaming avg-pool of both pixel slabs + (on the last grid step)
# encoder stand-in, temporal feature diff, both Classifier2 heads, AttentionBlock
# and the 4 per-timestep exit heads.
# ---------------------------------------------------------------------------
def _make_fused_kernel(hw, tb):
    inv_hw = float(1.0 / hw)
    inv_sqrt_key = float(1.0 / math.sqrt(KEY))

    def kernel(img_ref, dif_ref, kimg_ref, kdif_ref, sel_ref, w1_ref, scsh_ref,
               w2_ref, b2_ref, tmask_ref, bad_ref, wqkv_ref, bqkv_ref,
               cwt_ref, cbt_ref, out_ref, acc_i_ref, acc_d_ref):
        step = pl.program_id(0)
        nsteps = pl.num_programs(0)

        @pl.when(step == 0)
        def _init():
            acc_i_ref[...] = jnp.zeros_like(acc_i_ref)
            acc_d_ref[...] = jnp.zeros_like(acc_d_ref)

        # Streaming phase (HBM-bound): row sums of the current H*W chunk, f32 accum.
        acc_i_ref[...] += jnp.sum(img_ref[...].astype(jnp.float32), axis=1, keepdims=True)
        acc_d_ref[...] += jnp.sum(dif_ref[...].astype(jnp.float32), axis=1, keepdims=True)

        @pl.when(step == nsteps - 1)
        def _epilogue():
            # AdaptiveAvgPool2d((1,1)) -> pooled 1x1-conv encoder stand-in + temporal
            # feature diff, as ONE (2*T*B, .) selection matmul over the channel-weighted
            # pooled means. The diff rows are padded to T slots per batch so every row
            # slice below is 8-aligned.
            mk = jnp.concatenate(
                [acc_i_ref[...] * jnp.float32(inv_hw) * kimg_ref[...],
                 acc_d_ref[...] * jnp.float32(inv_hw) * kdif_ref[...]], axis=0)
            pf = jnp.dot(sel_ref[...], mk, preferred_element_type=jnp.float32)   # (2*T*B, 512)

            # Both Classifier2 first layers in one MXU dot: w1 = [w1_img | w1_dfn].
            h = jnp.dot(pf, w1_ref[...], preferred_element_type=jnp.float32)     # (2*T*B, 32)
            h = jnp.maximum(h * scsh_ref[0:1, :] + scsh_ref[1:2, :], 0.0)
            h_img = h[0:tb, 0:CLS_MID]                                           # (T*B, 16)
            h_dif = h[tb:2 * tb, CLS_MID:2 * CLS_MID] * tmask_ref[...]           # zero at t=0

            sp = jnp.sum(h_img * w2_ref[0:1, :], axis=1, keepdims=True) + b2_ref[0:1, 0:1]
            tp = jnp.sum(h_dif * w2_ref[1:2, :], axis=1, keepdims=True) + b2_ref[0:1, 1:2]

            # AttentionBlock on (b-major) (T*B, 32) exit features, kept 2D: the
            # cross-batch + "key index > query index" mask makes the (T*B, T*B) scores
            # block-diagonal, and the PyTorch softmax over dim=1 (the QUERY axis) is a
            # softmax over rows here.
            x = jnp.concatenate([h_img, h_dif], axis=1)                          # (T*B, 32)
            qkv = jnp.dot(x, wqkv_ref[...], preferred_element_type=jnp.float32) + bqkv_ref[...]
            q = qkv[:, 0:KEY]
            kk = qkv[:, KEY:2 * KEY]
            v = qkv[:, 2 * KEY:2 * KEY + VAL]
            s = lax.dot_general(q, kk, (((1,), (1,)), ((), ())),
                                preferred_element_type=jnp.float32)              # (T*B, T*B)
            s = jnp.where(bad_ref[...] > 0.5, jnp.float32(-1e30), s) * jnp.float32(inv_sqrt_key)
            m = jnp.max(s, axis=0, keepdims=True)
            e = jnp.exp(s - m)
            attn = e * pl.reciprocal(jnp.sum(e, axis=0, keepdims=True), approx=True)
            o = jnp.dot(attn, v, preferred_element_type=jnp.float32)             # (T*B, 16)

            feat = jnp.concatenate([x, o], axis=1)                               # (T*B, 48)
            es = jnp.sum(feat * cwt_ref[...], axis=1, keepdims=True) + cbt_ref[...]

            # Single lane-dense (T*B, 128) output slab:
            #   [0:48] exit features | 48 exit-head score | 49 spatial | 50 temporal
            pad = jnp.zeros((tb, 128 - (ATT_IN + VAL) - 3), jnp.float32)
            out_ref[...] = jnp.concatenate([feat, es, sp, tp, pad], axis=1)

    return kernel


# ---------------------------------------------------------------------------
# Parameter init (deterministic, synthetic)
# ---------------------------------------------------------------------------
def init_params(key):
    ks = jax.random.split(key, 8)

    def he(k, shape, fan_in):
        return jax.random.normal(k, shape, jnp.float32) * math.sqrt(2.0 / fan_in)

    def classifier_params(k):
        k1, k2 = jax.random.split(k)
        return dict(
            w1=he(k1, (ENC_OUT, CLS_MID), ENC_OUT),
            b1=jnp.zeros((1, CLS_MID), jnp.float32),
            gamma=jnp.ones((1, CLS_MID), jnp.float32),
            beta=jnp.zeros((1, CLS_MID), jnp.float32),
            rm=jnp.zeros((1, CLS_MID), jnp.float32),   # BatchNorm1d running_mean (eval)
            rv=jnp.ones((1, CLS_MID), jnp.float32),    # BatchNorm1d running_var  (eval)
            w2=he(k2, (1, CLS_MID), CLS_MID),          # Linear(16->1) weight as a row
            b2=jnp.zeros((1, 1), jnp.float32),
        )

    return dict(
        img_enc_w=he(ks[0], (3, ENC_OUT), 3),
        img_enc_b=jnp.zeros((1, ENC_OUT), jnp.float32),
        dfn_enc_w=he(ks[1], (3, ENC_OUT), 3),
        dfn_enc_b=jnp.zeros((1, ENC_OUT), jnp.float32),
        img_cls=classifier_params(ks[2]),
        dfn_cls=classifier_params(ks[3]),
        attn=dict(
            wq=he(ks[4], (ATT_IN, KEY), ATT_IN), bq=jnp.zeros((1, KEY), jnp.float32),
            wk=he(ks[5], (ATT_IN, KEY), ATT_IN), bk=jnp.zeros((1, KEY), jnp.float32),
            wv=he(ks[6], (ATT_IN, VAL), ATT_IN), bv=jnp.zeros((1, VAL), jnp.float32),
        ),
        clss_w=he(ks[7], (4, 48), 48),
        clss_b=jnp.zeros((1, 4), jnp.float32),
    )


# ---------------------------------------------------------------------------
# TDNHCSAN forward
# ---------------------------------------------------------------------------
def tdn_hc_san_forward(params, img_seq, diff_seq):
    B, T, C, H, W = img_seq.shape
    assert T > 2
    assert T == params["clss_w"].shape[0]      # 4 exit heads <-> seq_length=4
    HW = H * W
    TB = B * T
    n_img = B * T * C
    n_dif = B * (T - 1) * C

    # Native-layout (free) reshapes: rows are (b, t, c), H*W stays lane-contiguous.
    # No HBM transpose / copy of the pixel tensors.
    img2d = img_seq.reshape(n_img, HW)
    dif2d = diff_seq.reshape(n_dif, HW)

    pi, pd, pa = params["img_cls"], params["dfn_cls"], params["attn"]

    def bn_fold(p):  # eval-mode BatchNorm1d (+ preceding Linear bias) -> scale/shift
        scale = p["gamma"] * lax.rsqrt(p["rv"] + BN_EPS)
        shift = (p["b1"] - p["rm"]) * scale + p["beta"]
        return scale, shift

    sci, shi = bn_fold(pi)
    scd, shd = bn_fold(pd)
    # Encoder biases pass linearly through the first Linear -> fold into the shift
    # (the img-encoder bias cancels inside the temporal feature diff).
    shi = shi + jnp.dot(params["img_enc_b"], pi["w1"]) * sci
    shd = shd + jnp.dot(params["dfn_enc_b"], pd["w1"]) * scd

    w1cat = jnp.concatenate([pi["w1"], pd["w1"]], axis=1)                      # (512, 32)
    scsh = jnp.concatenate([jnp.concatenate([sci, scd], axis=1),
                            jnp.concatenate([shi, shd], axis=1)], axis=0)      # (2, 32)
    w2cat = jnp.concatenate([pi["w2"], pd["w2"]], axis=0)                      # (2, 16)
    b2 = jnp.concatenate([pi["b2"], pd["b2"]], axis=1)                         # (1, 2)
    wqkv = jnp.concatenate([pa["wq"], pa["wk"], pa["wv"]], axis=1)             # (32, 48)
    bqkv = jnp.concatenate([pa["bq"], pa["bk"], pa["bv"]], axis=1)             # (1, 48)
    kimg = jnp.tile(params["img_enc_w"], (B * T, 1))                           # (n_img, 512)
    kdif = jnp.tile(params["dfn_enc_w"], (B * (T - 1), 1))                     # (n_dif, 512)
    cwt = jnp.tile(params["clss_w"], (B, 1))                                   # (T*B, 48)
    cbt = jnp.tile(params["clss_b"].reshape(T, 1), (B, 1))                     # (T*B, 1)

    # Trace-time constant selection matrix: maps (b,t,c)-ordered pooled means to
    # pf_img rows (b-major) and (dfn-encoder + temporal-feature-diff) rows, padded to
    # T slots per batch (t=0 rows are all-zero and masked after the ReLU).
    sel_np = np.zeros((2 * TB, n_img + n_dif), np.float32)
    for b in range(B):
        for t in range(T):
            n = b * T + t
            for c in range(C):
                sel_np[n, n * C + c] = 1.0
            if t >= 1:
                for c in range(C):
                    sel_np[TB + n, n * C + c] += 1.0
                    sel_np[TB + n, (n - 1) * C + c] -= 1.0
                    sel_np[TB + n, n_img + (b * (T - 1) + t - 1) * C + c] = 1.0
    tmask_np = (np.arange(TB) % T != 0).astype(np.float32).reshape(TB, 1)
    qr = np.arange(TB)[:, None]
    kr = np.arange(TB)[None, :]
    # masked = different batch OR key time index > query time index (PyTorch mask)
    bad_np = ((qr // T != kr // T) | ((kr % T) > (qr % T))).astype(np.float32)

    chunk = _pick_chunk(HW, n_img + n_dif)
    assert HW % chunk == 0
    n_steps = HW // chunk

    def _const_spec(arr):
        nd = arr.ndim
        return pl.BlockSpec(arr.shape, lambda k, _n=nd: (0,) * _n)

    consts = [kimg, kdif, jnp.asarray(sel_np), w1cat, scsh, w2cat, b2,
              jnp.asarray(tmask_np), jnp.asarray(bad_np), wqkv, bqkv, cwt, cbt]

    # TODO(synk): the single grid axis is the H*W reduction ("arbitrary"); at larger
    # batch a leading "parallel" row-block axis could shard the pooling across v7x's
    # two TensorCores, but with B*T*C rows this small it would only add overhead.
    packed = pl.pallas_call(
        _make_fused_kernel(HW, TB),
        out_shape=jax.ShapeDtypeStruct((TB, 128), jnp.float32),
        grid=(n_steps,),
        in_specs=[pl.BlockSpec((n_img, chunk), lambda k: (0, k)),
                  pl.BlockSpec((n_dif, chunk), lambda k: (0, k))]
                 + [_const_spec(c) for c in consts],
        out_specs=pl.BlockSpec((TB, 128), lambda k: (0, 0)),
        scratch_shapes=[pltpu.VMEM((n_img, 1), jnp.float32),
                        pltpu.VMEM((n_dif, 1), jnp.float32)],
        compiler_params=pltpu.CompilerParams(dimension_semantics=("arbitrary",)),
    )(img2d, dif2d, *consts)

    # Tiny unpack of the lane-dense output slab (a few hundred floats).
    exit_features = packed[:, :ATT_IN + VAL].reshape(B, T, ATT_IN + VAL)
    exit_scores = packed[:, ATT_IN + VAL].reshape(B, T)
    spatial = packed[:, ATT_IN + VAL + 1].reshape(B, T)
    temporal = packed[:, ATT_IN + VAL + 2].reshape(B, T)[:, 1:]

    spatial_scores = [spatial[:, j:j + 1] for j in range(T)]
    exit_feature_scores = [exit_scores[:, j:j + 1] for j in range(T)]

    img_sbn_scores = jnp.mean(spatial, axis=1)
    dym_dfn_scores = jnp.mean(temporal, axis=1)
    average_scores = jnp.stack([img_sbn_scores, dym_dfn_scores], axis=1).mean(axis=1)
    final_pred = [
        jnp.squeeze(jax.nn.sigmoid(img_sbn_scores)),
        jnp.squeeze(jax.nn.sigmoid(dym_dfn_scores)),
        jnp.squeeze(jax.nn.sigmoid(average_scores)),
    ]
    return final_pred, spatial_scores, exit_features, exit_feature_scores


if __name__ == "__main__":
    key = jax.random.PRNGKey(0)
    kp, ki, kd = jax.random.split(key, 3)
    params = init_params(kp)

    B, T, C, H, W = 2, 4, 3, 16, 16          # seq_length=4 (matches the 4 clss_layer heads)
    img_seq = jax.random.normal(ki, (B, T, C, H, W), jnp.float32)
    diff_seq = jax.random.normal(kd, (B, T - 1, C, H, W), jnp.float32)

    fwd = jax.jit(tdn_hc_san_forward)
    final_pred, spatial_scores, exit_features, exit_feature_scores = fwd(params, img_seq, diff_seq)
    jax.block_until_ready(final_pred)
    jax.block_until_ready(exit_features)
    jax.block_until_ready(exit_feature_scores)
    print("KERNEL_OK")
</pallas_src>

<mosaic_0001>
module attributes {stable_mosaic.version = 11 : i64} {
  func.func @kernel(%arg0: i32, %arg1: memref<24x128xf32, #tpu.memory_space<vmem>>, %arg2: memref<18x128xf32, #tpu.memory_space<vmem>>, %arg3: memref<24x512xf32, #tpu.memory_space<vmem>>, %arg4: memref<18x512xf32, #tpu.memory_space<vmem>>, %arg5: memref<16x42xf32, #tpu.memory_space<vmem>>, %arg6: memref<512x32xf32, #tpu.memory_space<vmem>>, %arg7: memref<2x32xf32, #tpu.memory_space<vmem>>, %arg8: memref<2x16xf32, #tpu.memory_space<vmem>>, %arg9: memref<1x2xf32, #tpu.memory_space<vmem>>, %arg10: memref<8x1xf32, #tpu.memory_space<vmem>>, %arg11: memref<8x8xf32, #tpu.memory_space<vmem>>, %arg12: memref<32x48xf32, #tpu.memory_space<vmem>>, %arg13: memref<1x48xf32, #tpu.memory_space<vmem>>, %arg14: memref<8x48xf32, #tpu.memory_space<vmem>>, %arg15: memref<8x1xf32, #tpu.memory_space<vmem>>, %arg16: memref<8x128xf32, #tpu.memory_space<vmem>>, %arg17: memref<24x1xf32, #tpu.memory_space<vmem>>, %arg18: memref<18x1xf32, #tpu.memory_space<vmem>>) attributes {dimension_semantics = [#tpu.dimension_semantics<arbitrary>], iteration_bounds = array<i64: 2>, scalar_prefetch = 0 : i64, scratch_operands = 2 : i64, tpu.core_type = #tpu.core_type<tc>, window_params = [{transform_indices = @transform_0, window_bounds = array<i64: 24, 128>}, {transform_indices = @transform_1, window_bounds = array<i64: 18, 128>}, {pipeline_mode = #tpu.pipeline_mode<synchronous>, transform_indices = @transform_2, window_bounds = array<i64: 24, 512>}, {pipeline_mode = #tpu.pipeline_mode<synchronous>, transform_indices = @transform_3, window_bounds = array<i64: 18, 512>}, {pipeline_mode = #tpu.pipeline_mode<synchronous>, transform_indices = @transform_4, window_bounds = array<i64: 16, 42>}, {pipeline_mode = #tpu.pipeline_mode<synchronous>, transform_indices = @transform_5, window_bounds = array<i64: 512, 32>}, {pipeline_mode = #tpu.pipeline_mode<synchronous>, transform_indices = @transform_6, window_bounds = array<i64: 2, 32>}, {pipeline_mode = #tpu.pipeline_mode<synchronous>, transform_indices = @transform_7, window_bounds = array<i64: 2, 16>}, {pipeline_mode = #tpu.pipeline_mode<synchronous>, transform_indices = @transform_8, window_bounds = array<i64: 1, 2>}, {pipeline_mode = #tpu.pipeline_mode<synchronous>, transform_indices = @transform_9, window_bounds = array<i64: 8, 1>}, {pipeline_mode = #tpu.pipeline_mode<synchronous>, transform_indices = @transform_10, window_bounds = array<i64: 8, 8>}, {pipeline_mode = #tpu.pipeline_mode<synchronous>, transform_indices = @transform_11, window_bounds = array<i64: 32, 48>}, {pipeline_mode = #tpu.pipeline_mode<synchronous>, transform_indices = @transform_12, window_bounds = array<i64: 1, 48>}, {pipeline_mode = #tpu.pipeline_mode<synchronous>, transform_indices = @transform_13, window_bounds = array<i64: 8, 48>}, {pipeline_mode = #tpu.pipeline_mode<synchronous>, transform_indices = @transform_14, window_bounds = array<i64: 8, 1>}, {pipeline_mode = #tpu.pipeline_mode<synchronous>, transform_indices = @transform_15, window_bounds = array<i64: 8, 128>}]} {
    %c0_i32 = arith.constant 0 : i32
    %0 = arith.cmpi eq, %arg0, %c0_i32 : i32
    %1 = arith.extui %0 : i1 to i32
    %c0_i32_0 = arith.constant 0 : i32
    %2 = arith.cmpi ne, %1, %c0_i32_0 : i32
    scf.if %2 {
      %cst_14 = arith.constant 0.000000e+00 : f32
      %18 = vector.broadcast %cst_14 : f32 to vector<24x1xf32>
      %c0_15 = arith.constant 0 : index
      %c0_16 = arith.constant 0 : index
      %19 = vector.load %arg17[%c0_15, %c0_16] : memref<24x1xf32, #tpu.memory_space<vmem>>, vector<24x1xf32>
      tpu.vector_store %arg17[%c0_15, %c0_16], %18 {strides = array<i32>} : memref<24x1xf32, #tpu.memory_space<vmem>>, vector<24x1xf32>,
      %cst_17 = arith.constant 0.000000e+00 : f32
      %20 = vector.broadcast %cst_17 : f32 to vector<18x1xf32>
      %c0_18 = arith.constant 0 : index
      %c0_19 = arith.constant 0 : index
      %21 = vector.load %arg18[%c0_18, %c0_19] : memref<18x1xf32, #tpu.memory_space<vmem>>, vector<18x1xf32>
      tpu.vector_store %arg18[%c0_18, %c0_19], %20 {strides = array<i32>} : memref<18x1xf32, #tpu.memory_space<vmem>>, vector<18x1xf32>,
    } else {
    }
    %c0 = arith.constant 0 : index
    %c0_1 = arith.constant 0 : index
    %3 = vector.load %arg17[%c0, %c0_1] : memref<24x1xf32, #tpu.memory_space<vmem>>, vector<24x1xf32>
    %c0_2 = arith.constant 0 : index
    %c0_3 = arith.constant 0 : index
    %4 = vector.load %arg1[%c0_2, %c0_3] : memref<24x128xf32, #tpu.memory_space<vmem>>, vector<24x128xf32>
    %cst = arith.constant dense<0.000000e+00> : vector<24xf32>
    %5 = vector.multi_reduction <add>, %4, %cst [1] : vector<24x128xf32> to vector<24xf32>
    %6 = vector.shape_cast %5 : vector<24xf32> to vector<24x1xf32>
    %7 = arith.addf %3, %6 : vector<24x1xf32>
    %c0_4 = arith.constant 0 : index
    %c0_5 = arith.constant 0 : index
    %8 = vector.load %arg17[%c0_4, %c0_5] : memref<24x1xf32, #tpu.memory_space<vmem>>, vector<24x1xf32>
    tpu.vector_store %arg17[%c0_4, %c0_5], %7 {strides = array<i32>} : memref<24x1xf32, #tpu.memory_space<vmem>>, vector<24x1xf32>,
    %c0_6 = arith.constant 0 : index
    %c0_7 = arith.constant 0 : index
    %9 = vector.load %arg18[%c0_6, %c0_7] : memref<18x1xf32, #tpu.memory_space<vmem>>, vector<18x1xf32>
    %c0_8 = arith.constant 0 : index
    %c0_9 = arith.constant 0 : index
    %10 = vector.load %arg2[%c0_8, %c0_9] : memref<18x128xf32, #tpu.memory_space<vmem>>, vector<18x128xf32>
    %cst_10 = arith.constant dense<0.000000e+00> : vector<18xf32>
    %11 = vector.multi_reduction <add>, %10, %cst_10 [1] : vector<18x128xf32> to vector<18xf32>
    %12 = vector.shape_cast %11 : vector<18xf32> to vector<18x1xf32>
    %13 = arith.addf %9, %12 : vector<18x1xf32>
    %c0_11 = arith.constant 0 : index
    %c0_12 = arith.constant 0 : index
    %14 = vector.load %arg18[%c0_11, %c0_12] : memref<18x1xf32, #tpu.memory_space<vmem>>, vector<18x1xf32>
    tpu.vector_store %arg18[%c0_11, %c0_12], %13 {strides = array<i32>} : memref<18x1xf32, #tpu.memory_space<vmem>>, vector<18x1xf32>,
    %c1_i32 = arith.constant 1 : i32
    %15 = arith.cmpi eq, %arg0, %c1_i32 : i32
    %16 = arith.extui %15 : i1 to i32
    %c0_i32_13 = arith.constant 0 : i32
    %17 = arith.cmpi ne, %16, %c0_i32_13 : i32
    scf.if %17 {
      %c0_14 = arith.constant 0 : index
      %c0_15 = arith.constant 0 : index
      %18 = vector.load %arg17[%c0_14, %c0_15] : memref<24x1xf32, #tpu.memory_space<vmem>>, vector<24x1xf32>
      %cst_16 = arith.constant 3.906250e-03 : f32
      %19 = vector.broadcast %cst_16 : f32 to vector<24x1xf32>
      %20 = arith.mulf %18, %19 : vector<24x1xf32>
      %c0_17 = arith.constant 0 : index
      %c0_18 = arith.constant 0 : index
      %21 = vector.load %arg3[%c0_17, %c0_18] : memref<24x512xf32, #tpu.memory_space<vmem>>, vector<24x512xf32>
      %22 = vector.broadcast %20 : vector<24x1xf32> to vector<24x512xf32>
      %23 = arith.mulf %22, %21 : vector<24x512xf32>
      %c0_19 = arith.constant 0 : index
      %c0_20 = arith.constant 0 : index
      %24 = vector.load %arg18[%c0_19, %c0_20] : memref<18x1xf32, #tpu.memory_space<vmem>>, vector<18x1xf32>
      %cst_21 = arith.constant 3.906250e-03 : f32
      %25 = vector.broadcast %cst_21 : f32 to vector<18x1xf32>
      %26 = arith.mulf %24, %25 : vector<18x1xf32>
      %c0_22 = arith.constant 0 : index
      %c0_23 = arith.constant 0 : index
      %27 = vector.load %arg4[%c0_22, %c0_23] : memref<18x512xf32, #tpu.memory_space<vmem>>, vector<18x512xf32>
      %28 = vector.broadcast %26 : vector<18x1xf32> to vector<18x512xf32>
      %29 = arith.mulf %28, %27 : vector<18x512xf32>
      %30 = tpu.concatenate %23, %29 in 0 : vector<24x512xf32>, vector<18x512xf32> -> vector<42x512xf32>
      %c0_24 = arith.constant 0 : index
      %c0_25 = arith.constant 0 : index
      %31 = vector.load %arg5[%c0_24, %c0_25] : memref<16x42xf32, #tpu.memory_space<vmem>>, vector<16x42xf32>
      %cst_26 = arith.constant dense<0.000000e+00> : vector<16x512xf32>
      %32 = tpu.matmul %31, %30, %cst_26 {dimension_numbers = #tpu.dot_dimension_numbers<[1], [0], [0], [1], [0, 0, 1, 1], [], []>} : vector<16x42xf32>, vector<42x512xf32>, vector<16x512xf32> -> vector<16x512xf32>
      %c0_27 = arith.constant 0 : index
      %c0_28 = arith.constant 0 : index
      %33 = vector.load %arg6[%c0_27, %c0_28] : memref<512x32xf32, #tpu.memory_space<vmem>>, vector<512x32xf32>
      %cst_29 = arith.constant dense<0.000000e+00> : vector<16x32xf32>
      %34 = tpu.matmul %32, %33, %cst_29 {dimension_numbers = #tpu.dot_dimension_numbers<[1], [0], [0], [1], [0, 0, 1, 1], [], []>} : vector<16x512xf32>, vector<512x32xf32>, vector<16x32xf32> -> vector<16x32xf32>
      %c0_30 = arith.constant 0 : index
      %c0_31 = arith.constant 0 : index
      %35 = vector.load %arg7[%c0_30, %c0_31] : memref<2x32xf32, #tpu.memory_space<vmem>>, vector<1x32xf32>
      %36 = vector.broadcast %35 : vector<1x32xf32> to vector<16x32xf32>
      %37 = arith.mulf %34, %36 : vector<16x32xf32>
      %c1 = arith.constant 1 : index
      %c0_32 = arith.constant 0 : index
      %38 = vector.load %arg7[%c1, %c0_32] : memref<2x32xf32, #tpu.memory_space<vmem>>, vector<1x32xf32>
      %39 = vector.broadcast %38 : vector<1x32xf32> to vector<16x32xf32>
      %40 = arith.addf %37, %39 : vector<16x32xf32>
      %cst_33 = arith.constant 0.000000e+00 : f32
      %41 = vector.broadcast %cst_33 : f32 to vector<16x32xf32>
      %42 = arith.maximumf %40, %41 : vector<16x32xf32>
      %43 = vector.extract_strided_slice %42 {offsets = [0, 0], sizes = [8, 16], strides = [1, 1]} : vector<16x32xf32> to vector<8x16xf32>
      %44 = vector.extract_strided_slice %42 {offsets = [8, 16], sizes = [8, 16], strides = [1, 1]} : vector<16x32xf32> to vector<8x16xf32>
      %c0_34 = arith.constant 0 : index
      %c0_35 = arith.constant 0 : index
      %45 = vector.load %arg10[%c0_34, %c0_35] : memref<8x1xf32, #tpu.memory_space<vmem>>, vector<8x1xf32>
      %46 = vector.broadcast %45 : vector<8x1xf32> to vector<8x16xf32>
      %47 = arith.mulf %44, %46 : vector<8x16xf32>
      %c0_36 = arith.constant 0 : index
      %c0_37 = arith.constant 0 : index
      %48 = vector.load %arg8[%c0_36, %c0_37] : memref<2x16xf32, #tpu.memory_space<vmem>>, vector<1x16xf32>
      %49 = vector.broadcast %48 : vector<1x16xf32> to vector<8x16xf32>
      %50 = arith.mulf %43, %49 : vector<8x16xf32>
      %cst_38 = arith.constant dense<0.000000e+00> : vector<8xf32>
      %51 = vector.multi_reduction <add>, %50, %cst_38 [1] : vector<8x16xf32> to vector<8xf32>
      %52 = vector.shape_cast %51 : vector<8xf32> to vector<8x1xf32>
      %c0_39 = arith.constant 0 : index
      %c0_40 = arith.constant 0 : index
      %53 = vector.load %arg9[%c0_39, %c0_40] : memref<1x2xf32, #tpu.memory_space<vmem>>, vector<1x1xf32>
      %54 = vector.broadcast %53 : vector<1x1xf32> to vector<8x1xf32>
      %55 = arith.addf %52, %54 : vector<8x1xf32>
      %c1_41 = arith.constant 1 : index
      %c0_42 = arith.constant 0 : index
      %56 = vector.load %arg8[%c1_41, %c0_42] : memref<2x16xf32, #tpu.memory_space<vmem>>, vector<1x16xf32>
      %57 = vector.broadcast %56 : vector<1x16xf32> to vector<8x16xf32>
      %58 = arith.mulf %47, %57 : vector<8x16xf32>
      %cst_43 = arith.constant dense<0.000000e+00> : vector<8xf32>
      %59 = vector.multi_reduction <add>, %58, %cst_43 [1] : vector<8x16xf32> to vector<8xf32>
      %60 = vector.shape_cast %59 : vector<8xf32> to vector<8x1xf32>
      %c0_44 = arith.constant 0 : index
      %c1_45 = arith.constant 1 : index
      %61 = vector.load %arg9[%c0_44, %c1_45] : memref<1x2xf32, #tpu.memory_space<vmem>>, vector<1x1xf32>
      %62 = vector.broadcast %61 : vector<1x1xf32> to vector<8x1xf32>
      %63 = arith.addf %60, %62 : vector<8x1xf32>
      %64 = tpu.concatenate %43, %47 in 1 : vector<8x16xf32>, vector<8x16xf32> -> vector<8x32xf32>
      %c0_46 = arith.constant 0 : index
      %c0_47 = arith.constant 0 : index
      %65 = vector.load %arg12[%c0_46, %c0_47] : memref<32x48xf32, #tpu.memory_space<vmem>>, vector<32x48xf32>
      %cst_48 = arith.constant dense<0.000000e+00> : vector<8x48xf32>
      %66 = tpu.matmul %64, %65, %cst_48 {dimension_numbers = #tpu.dot_dimension_numbers<[1], [0], [0], [1], [0, 0, 1, 1], [], []>} : vector<8x32xf32>, vector<32x48xf32>, vector<8x48xf32> -> vector<8x48xf32>
      %c0_49 = arith.constant 0 : index
      %c0_50 = arith.constant 0 : index
      %67 = vector.load %arg13[%c0_49, %c0_50] : memref<1x48xf32, #tpu.memory_space<vmem>>, vector<1x48xf32>
      %68 = vector.broadcast %67 : vector<1x48xf32> to vector<8x48xf32>
      %69 = arith.addf %66, %68 : vector<8x48xf32>
      %70 = vector.extract_strided_slice %69 {offsets = [0, 0], sizes = [8, 16], strides = [1, 1]} : vector<8x48xf32> to vector<8x16xf32>
      %71 = vector.extract_strided_slice %69 {offsets = [0, 16], sizes = [8, 16], strides = [1, 1]} : vector<8x48xf32> to vector<8x16xf32>
      %72 = vector.extract_strided_slice %69 {offsets = [0, 32], sizes = [8, 16], strides = [1, 1]} : vector<8x48xf32> to vector<8x16xf32>
      %cst_51 = arith.constant dense<0.000000e+00> : vector<8x8xf32>
      %73 = tpu.matmul %70, %71, %cst_51 {dimension_numbers = #tpu.dot_dimension_numbers<[1], [1], [0], [0], [0, 0, 1, 0], [], []>} : vector<8x16xf32>, vector<8x16xf32>, vector<8x8xf32> -> vector<8x8xf32>
      %c0_52 = arith.constant 0 : index
      %c0_53 = arith.constant 0 : index
      %74 = vector.load %arg11[%c0_52, %c0_53] : memref<8x8xf32, #tpu.memory_space<vmem>>, vector<8x8xf32>
      %cst_54 = arith.constant 5.000000e-01 : f32
      %75 = vector.broadcast %cst_54 : f32 to vector<8x8xf32>
      %76 = arith.cmpf ogt, %74, %75 : vector<8x8xf32>
      %cst_55 = arith.constant -1.000000e+30 : f32
      %77 = vector.broadcast %cst_55 : f32 to vector<8x8xf32>
      %78 = arith.select %76, %77, %73 : vector<8x8xi1>, vector<8x8xf32>
      %cst_56 = arith.constant 2.500000e-01 : f32
      %79 = vector.broadcast %cst_56 : f32 to vector<8x8xf32>
      %80 = arith.mulf %78, %79 : vector<8x8xf32>
      %cst_57 = arith.constant dense<0xFF800000> : vector<8xf32>
      %81 = vector.multi_reduction <maximumf>, %80, %cst_57 [0] : vector<8x8xf32> to vector<8xf32>
      %82 = vector.shape_cast %81 : vector<8xf32> to vector<1x8xf32>
      %83 = vector.broadcast %82 : vector<1x8xf32> to vector<8x8xf32>
      %84 = arith.subf %80, %83 : vector<8x8xf32>
      %85 = math.exp %84 : vector<8x8xf32>
      %cst_58 = arith.constant dense<0.000000e+00> : vector<8xf32>
      %86 = vector.multi_reduction <add>, %85, %cst_58 [0] : vector<8x8xf32> to vector<8xf32>
      %87 = vector.shape_cast %86 : vector<8xf32> to vector<1x8xf32>
      %88 = tpu.reciprocal %87 {approx = true} : vector<1x8xf32> -> vector<1x8xf32>
      %89 = vector.broadcast %88 : vector<1x8xf32> to vector<8x8xf32>
      %90 = arith.mulf %85, %89 : vector<8x8xf32>
      %cst_59 = arith.constant dense<0.000000e+00> : vector<8x16xf32>
      %91 = tpu.matmul %90, %72, %cst_59 {dimension_numbers = #tpu.dot_dimension_numbers<[1], [0], [0], [1], [0, 0, 1, 1], [], []>} : vector<8x8xf32>, vector<8x16xf32>, vector<8x16xf32> -> vector<8x16xf32>
      %92 = tpu.concatenate %64, %91 in 1 : vector<8x32xf32>, vector<8x16xf32> -> vector<8x48xf32>
      %c0_60 = arith.constant 0 : index
      %c0_61 = arith.constant 0 : index
      %93 = vector.load %arg14[%c0_60, %c0_61] : memref<8x48xf32, #tpu.memory_space<vmem>>, vector<8x48xf32>
      %94 = arith.mulf %92, %93 : vector<8x48xf32>
      %cst_62 = arith.constant dense<0.000000e+00> : vector<8xf32>
      %95 = vector.multi_reduction <add>, %94, %cst_62 [1] : vector<8x48xf32> to vector<8xf32>
      %96 = vector.shape_cast %95 : vector<8xf32> to vector<8x1xf32>
      %c0_63 = arith.constant 0 : index
      %c0_64 = arith.constant 0 : index
      %97 = vector.load %arg15[%c0_63, %c0_64] : memref<8x1xf32, #tpu.memory_space<vmem>>, vector<8x1xf32>
      %98 = arith.addf %96, %97 : vector<8x1xf32>
      %cst_65 = arith.constant 0.000000e+00 : f32
      %99 = vector.broadcast %cst_65 : f32 to vector<8x77xf32>
      %100 = tpu.concatenate %92, %98, %55, %63, %99 in 1 : vector<8x48xf32>, vector<8x1xf32>, vector<8x1xf32>, vector<8x1xf32>, vector<8x77xf32> -> vector<8x128xf32>
      %c0_66 = arith.constant 0 : index
      %c0_67 = arith.constant 0 : index
      %101 = vector.load %arg16[%c0_66, %c0_67] : memref<8x128xf32, #tpu.memory_space<vmem>>, vector<8x128xf32>
      tpu.vector_store %arg16[%c0_66, %c0_67], %100 {strides = array<i32>} : memref<8x128xf32, #tpu.memory_space<vmem>>, vector<8x128xf32>,
    } else {
    }
    return
  }
  func.func @transform_0(%arg0: i32) -> (i32, i32) {
    %c0_i32 = arith.constant 0 : i32
    %c0_i32_0 = arith.constant 0 : i32
    return %c0_i32, %arg0 : i32, i32
  }
  func.func @transform_1(%arg0: i32) -> (i32, i32) {
    %c0_i32 = arith.constant 0 : i32
    %c0_i32_0 = arith.constant 0 : i32
    return %c0_i32, %arg0 : i32, i32
  }
  func.func @transform_2(%arg0: i32) -> (i32, i32) {
    %c0_i32 = arith.constant 0 : i32
    %c0_i32_0 = arith.constant 0 : i32
    %c0_i32_1 = arith.constant 0 : i32
    return %c0_i32, %c0_i32_0 : i32, i32
  }
  func.func @transform_3(%arg0: i32) -> (i32, i32) {
    %c0_i32 = arith.constant 0 : i32
    %c0_i32_0 = arith.constant 0 : i32
    %c0_i32_1 = arith.constant 0 : i32
    return %c0_i32, %c0_i32_0 : i32, i32
  }
  func.func @transform_4(%arg0: i32) -> (i32, i32) {
    %c0_i32 = arith.constant 0 : i32
    %c0_i32_0 = arith.constant 0 : i32
    %c0_i32_1 = arith.constant 0 : i32
    return %c0_i32, %c0_i32_0 : i32, i32
  }
  func.func @transform_5(%arg0: i32) -> (i32, i32) {
    %c0_i32 = arith.constant 0 : i32
    %c0_i32_0 = arith.constant 0 : i32
    %c0_i32_1 = arith.constant 0 : i32
    return %c0_i32, %c0_i32_0 : i32, i32
  }
  func.func @transform_6(%arg0: i32) -> (i32, i32) {
    %c0_i32 = arith.constant 0 : i32
    %c0_i32_0 = arith.constant 0 : i32
    %c0_i32_1 = arith.constant 0 : i32
    return %c0_i32, %c0_i32_0 : i32, i32
  }
  func.func @transform_7(%arg0: i32) -> (i32, i32) {
    %c0_i32 = arith.constant 0 : i32
    %c0_i32_0 = arith.constant 0 : i32
    %c0_i32_1 = arith.constant 0 : i32
    return %c0_i32, %c0_i32_0 : i32, i32
  }
  func.func @transform_8(%arg0: i32) -> (i32, i32) {
    %c0_i32 = arith.constant 0 : i32
    %c0_i32_0 = arith.constant 0 : i32
    %c0_i32_1 = arith.constant 0 : i32
    return %c0_i32, %c0_i32_0 : i32, i32
  }
  func.func @transform_9(%arg0: i32) -> (i32, i32) {
    %c0_i32 = arith.constant 0 : i32
    %c0_i32_0 = arith.constant 0 : i32
    %c0_i32_1 = arith.constant 0 : i32
    return %c0_i32, %c0_i32_0 : i32, i32
  }
  func.func @transform_10(%arg0: i32) -> (i32, i32) {
    %c0_i32 = arith.constant 0 : i32
    %c0_i32_0 = arith.constant 0 : i32
    %c0_i32_1 = arith.constant 0 : i32
    return %c0_i32, %c0_i32_0 : i32, i32
  }
  func.func @transform_11(%arg0: i32) -> (i32, i32) {
    %c0_i32 = arith.constant 0 : i32
    %c0_i32_0 = arith.constant 0 : i32
    %c0_i32_1 = arith.constant 0 : i32
    return %c0_i32, %c0_i32_0 : i32, i32
  }
  func.func @transform_12(%arg0: i32) -> (i32, i32) {
    %c0_i32 = arith.constant 0 : i32
    %c0_i32_0 = arith.constant 0 : i32
    %c0_i32_1 = arith.constant 0 : i32
    return %c0_i32, %c0_i32_0 : i32, i32
  }
  func.func @transform_13(%arg0: i32) -> (i32, i32) {
    %c0_i32 = arith.constant 0 : i32
    %c0_i32_0 = arith.constant 0 : i32
    %c0_i32_1 = arith.constant 0 : i32
    return %c0_i32, %c0_i32_0 : i32, i32
  }
  func.func @transform_14(%arg0: i32) -> (i32, i32) {
    %c0_i32 = arith.constant 0 : i32
    %c0_i32_0 = arith.constant 0 : i32
    %c0_i32_1 = arith.constant 0 : i32
    return %c0_i32, %c0_i32_0 : i32, i32
  }
  func.func @transform_15(%arg0: i32) -> (i32, i32) {
    %c0_i32 = arith.constant 0 : i32
    %c0_i32_0 = arith.constant 0 : i32
    %c0_i32_1 = arith.constant 0 : i32
    return %c0_i32, %c0_i32_0 : i32, i32
  }
}

</mosaic_0001>

<bundles_post_ra>
// kernel: tile.23
= control target key start
LH: loop header
LB: loop body
LE: loop exit
PB: predicated region body
PF: predicated region fallthrough
CT: control target
= control target key end

     0   :  { %s568_s0 = inlined_call_operand.vmem [shape: f32[8,3,512], index: 0, kind: input, shape index: {}]   ;;  %s569_s1 = inlined_call_operand.vmem [shape: f32[24,512], index: 1, kind: output, shape index: {}]  }
   0x1   :  { %v272_v0 = vld [vmem:[%s568_s0 + $0x7c] sm:$0xf]  ;;  %v273_v1 = vld [vmem:[%s568_s0 + $0x78] sm:$0xf]  ;;  %v274_v2 = vld [vmem:[%s568_s0 + $0x74] sm:$0xf] }
   0x2   :  { %7 = vst [vmem:[#allocation0 + $0x48] sm:$0xf] %v272_v0  ;;  %v275_v3 = vld [vmem:[%s568_s0 + $0x70] sm:$0xf]  ;;  %v276_v4 = vld [vmem:[%s568_s0 + $0x6c] sm:$0xf] }
   0x3   :  { %11 = vst [vmem:[#allocation0 + $0xf8] sm:$0xf] %v273_v1  ;;  %v277_v5 = vld [vmem:[%s568_s0 + $0x68] sm:$0xf]  ;;  %v278_v6 = vld [vmem:[%s568_s0 + $0x64] sm:$0xf] }
   0x4   :  { %15 = vst [vmem:[#allocation0 + $0x20] sm:$0xf] %v274_v2  ;;  %v279_v7 = vld [vmem:[%s568_s0 + $0x60] sm:$0xf]  ;;  %v280_v8 = vld [vmem:[%s568_s0 + $0x5c] sm:$0xf] }
   0x5   :  { %19 = vst [vmem:[#allocation0 + $0xe0] sm:$0xf] %v275_v3  ;;  %v281_v9 = vld [vmem:[%s568_s0 + $0x58] sm:$0xf]  ;;  %v282_v10 = vld [vmem:[%s568_s0 + $0x54] sm:$0xf] }
   0x6   :  { %23 = vst [vmem:[#allocation0 + $0xa8] sm:$0xf] %v276_v4  ;;  %v283_v11 = vld [vmem:[%s568_s0 + $0x50] sm:$0xf]  ;;  %v284_v12 = vld [vmem:[%s568_s0 + $0x4c] sm:$0xf] }
   0x7   :  { %27 = vst [vmem:[#allocation0 + $0x90] sm:$0xf] %v277_v5  ;;  %v285_v13 = vld [vmem:[%s568_s0 + $0x48] sm:$0xf]  ;;  %v286_v14 = vld [vmem:[%s568_s0 + $0x44] sm:$0xf] }
   0x8   :  { %31 = vst [vmem:[#allocation0 + $0xc8] sm:$0xf] %v278_v6  ;;  %v287_v15 = vld [vmem:[%s568_s0 + $0x40] sm:$0xf]  ;;  %v288_v16 = vld [vmem:[%s568_s0 + $0x3c] sm:$0xf] }
   0x9   :  { %35 = vst [vmem:[#allocation0 + $0xb0] sm:$0xf] %v279_v7  ;;  %v289_v17 = vld [vmem:[%s568_s0 + $0x38] sm:$0xf]  ;;  %v290_v18 = vld [vmem:[%s568_s0 + $0x34] sm:$0xf] }
   0xa   :  { %39 = vst [vmem:[#allocation0 + $0x78] sm:$0xf] %v280_v8  ;;  %v291_v19 = vld [vmem:[%s568_s0 + $0x30] sm:$0xf]  ;;  %v292_v20 = vld [vmem:[%s568_s0 + $0x2c] sm:$0xf] }
   0xb   :  { %43 = vst [vmem:[#allocation0 + $0x70] sm:$0xf] %v281_v9  ;;  %v293_v21 = vld [vmem:[%s568_s0 + $0x28] sm:$0xf]  ;;  %v294_v22 = vld [vmem:[%s568_s0 + $0x24] sm:$0xf] }
   0xc   :  { %47 = vst [vmem:[#allocation0 + $0x10] sm:$0xf] %v282_v10  ;;  %v295_v23 = vld [vmem:[%s568_s0 + $0x20] sm:$0xf]  ;;  %v296_v24 = vld [vmem:[%s568_s0 + $0x1c] sm:$0xf] }
   0xd   :  { %51 = vst [vmem:[#allocation0 + $0x40] sm:$0xf] %v283_v11  ;;  %v297_v25 = vld [vmem:[%s568_s0 + $0x18] sm:$0xf]  ;;  %v298_v26 = vld [vmem:[%s568_s0 + $0x14] sm:$0xf] }
   0xe   :  { %55 = vst [vmem:[#allocation0 + $0x98] sm:$0xf] %v284_v12  ;;  %v299_v27 = vld [vmem:[%s568_s0 + $0x10] sm:$0xf]  ;;  %v300_v28 = vld [vmem:[%s568_s0 + $0xc] sm:$0xf] }
   0xf   :  { %59 = vst [vmem:[#allocation0 + $0x8] sm:$0xf] %v285_v13  ;;  %v301_v29 = vld [vmem:[%s568_s0 + $0x8] sm:$0xf]  ;;  %v302_v30 = vld [vmem:[%s568_s0 + $0x4] sm:$0xf] }
  0x10   :  { %63 = vst [vmem:[#allocation0 + $0xf0] sm:$0xf] %v286_v14  ;;  %v128_v31 = vld [vmem:[%s568_s0] sm:$0xf]  ;;  %v241_v56 = vld [vmem:[#allocation0 + $0xb0] sm:$0x7]  }
  0x11   :  { %67 = vst [vmem:[#allocation0 + $0x80] sm:$0xf] %v287_v15  ;;  %v235_v55 = vld [vmem:[#allocation0 + $0x78] sm:$0x7]   ;;  %v245_v57 = vld [vmem:[#allocation0 + $0xc8] sm:$0x7]  }
  0x12   :  { %71 = vst [vmem:[#allocation0 + $0xc0] sm:$0xf] %v288_v16  ;;  %v229_v54 = vld [vmem:[#allocation0 + $0x70] sm:$0x7]   ;;  %v253_v59 = vld [vmem:[#allocation0 + $0xa8] sm:$0x7]  }
  0x13   :  { %75 = vst [vmem:[#allocation0 + $0xa0] sm:$0xf] %v289_v17  ;;  %v223_v53 = vld [vmem:[#allocation0 + $0x10] sm:$0x7]   ;;  %v257_v60 = vld [vmem:[#allocation0 + $0xe0] sm:$0x7]  }
  0x14   :  { %79 = vst [vmem:[#allocation0 + $0xb8] sm:$0xf] %v290_v18  ;;  %v217_v52 = vld [vmem:[#allocation0 + $0x40] sm:$0x7]   ;;  %v249_v58 = vld [vmem:[#allocation0 + $0x90] sm:$0x7]  }
  0x15   :  { %83 = vst [vmem:[#allocation0 + $0x30] sm:$0xf] %v291_v19  ;;  %v213_v51 = vld [vmem:[#allocation0 + $0x98] sm:$0x7]   ;;  %v261_v61 = vld [vmem:[#allocation0 + $0x20] sm:$0x7]  }
  0x16   :  { %87 = vst [vmem:[#allocation0 + $0x18] sm:$0xf] %v292_v20  ;;  %v209_v50 = vld [vmem:[#allocation0 + $0x8] sm:$0x7]   ;;  %v265_v62 = vld [vmem:[#allocation0 + $0xf8] sm:$0x7]  }
  0x17   :  { %91 = vst [vmem:[#allocation0 + $0x68] sm:$0xf] %v293_v21  ;;  %v205_v49 = vld [vmem:[#allocation0 + $0xf0] sm:$0x7]   ;;  %v269_v63 = vld [vmem:[#allocation0 + $0x48] sm:$0x7]  }
  0x18   :  { %95 = vst [vmem:[#allocation0 + $0x88] sm:$0xf] %v294_v22  ;;  %v201_v48 = vld [vmem:[#allocation0 + $0x80] sm:$0x7]  }
  0x19   :  { %99 = vst [vmem:[#allocation0 + $0x38] sm:$0xf] %v295_v23  ;;  %v197_v47 = vld [vmem:[#allocation0 + $0xc0] sm:$0x7]  }
  0x1a   :  { %103 = vst [vmem:[#allocation0 + $0x50] sm:$0xf] %v296_v24  ;;  %v193_v46 = vld [vmem:[#allocation0 + $0xa0] sm:$0x7]  }
  0x1b   :  { %107 = vst [vmem:[#allocation0 + $0x28] sm:$0xf] %v297_v25  ;;  %v189_v45 = vld [vmem:[#allocation0 + $0xb8] sm:$0x7]  }
  0x1c   :  { %111 = vst [vmem:[#allocation0 + $0xe8] sm:$0xf] %v298_v26  ;;  %v185_v44 = vld [vmem:[#allocation0 + $0x30] sm:$0x7]  }
  0x1d   :  { %115 = vst [vmem:[#allocation0 + $0xd0] sm:$0xf] %v299_v27  ;;  %v179_v43 = vld [vmem:[#allocation0 + $0x18] sm:$0x7]  }
  0x1e   :  { %119 = vst [vmem:[#allocation0 + $0x58] sm:$0xf] %v300_v28  ;;  %v173_v42 = vld [vmem:[#allocation0 + $0x68] sm:$0x7]  }
  0x1f   :  { %123 = vst [vmem:[#allocation0] sm:$0xf] %v301_v29  ;;  %v167_v41 = vld [vmem:[#allocation0 + $0x88] sm:$0x7]  }
  0x20   :  { %127 = vst [vmem:[#allocation0 + $0xd8] sm:$0xf] %v302_v30  ;;  %v161_v39 = vld [vmem:[#allocation0 + $0x38] sm:$0x7]  }
  0x21   :  { %129 = vst [vmem:[#allocation0 + $0x60] sm:$0xf] %v128_v31  ;;  %v157_v32 = vld [vmem:[#allocation0 + $0x50] sm:$0x7]  }
  0x22   :  { %v153_v33 = vld [vmem:[#allocation0 + $0x28] sm:$0x7]   ;;  %309 = vst [vmem:[%s569_s1 + $0x1b] sm:$0x7] %v157_v32  }
  0x23   :  { %v149_v34 = vld [vmem:[#allocation0 + $0xe8] sm:$0x7]   ;;  %308 = vst [vmem:[%s569_s1 + $0x13] sm:$0x7] %v153_v33  }
  0x24   :  { %v145_v35 = vld [vmem:[#allocation0 + $0xd0] sm:$0x7]   ;;  %307 = vst [vmem:[%s569_s1 + $0xb] sm:$0x7] %v149_v34  }
  0x25   :  { %v141_v36 = vld [vmem:[#allocation0 + $0x58] sm:$0x7]   ;;  %306 = vst [vmem:[%s569_s1 + $0x3] sm:$0x7] %v145_v35  }
  0x26   :  { %v137_v37 = vld [vmem:[#allocation0] sm:$0x7]   ;;  %305 = vst [vmem:[%s569_s1 + $0x18] sm:$0x7] %v141_v36  }
  0x27   :  { %v133_v38 = vld [vmem:[#allocation0 + $0xd8] sm:$0x7]   ;;  %304 = vst [vmem:[%s569_s1 + $0x10] sm:$0x7] %v137_v37  }
  0x28   :  { %v130_v40 = vld [vmem:[#allocation0 + $0x60] sm:$0x7]   ;;  %303 = vst [vmem:[%s569_s1 + $0x8] sm:$0x7] %v133_v38  }
  0x29   :  { %131 = vst [vmem:[%s569_s1] sm:$0x7] %v130_v40  }
  0x2a   :  { %310 = vst [vmem:[%s569_s1 + $0x6] sm:$0x3] %v161_v39  }
  0x2b   :  { %311 = vst [vmem:[%s569_s1 + $0x1e] sm:$0x4] %v161_v39  }
  0x2c   :  { %312 = vst [vmem:[%s569_s1 + $0xe] sm:$0x3] %v167_v41  }
  0x2d   :  { %313 = vst [vmem:[%s569_s1 + $0x26] sm:$0x4] %v167_v41  }
  0x2e   :  { %314 = vst [vmem:[%s569_s1 + $0x16] sm:$0x3] %v173_v42  }
  0x2f   :  { %315 = vst [vmem:[%s569_s1 + $0x2e] sm:$0x4] %v173_v42  }
  0x30   :  { %316 = vst [vmem:[%s569_s1 + $0x1e] sm:$0x3] %v179_v43  }
  0x31   :  { %317 = vst [vmem:[%s569_s1 + $0x36] sm:$0x4] %v179_v43  }
  0x32   :  { %318 = vst [vmem:[%s569_s1 + $0x21] sm:$0x7] %v185_v44  }
  0x33   :  { %319 = vst [vmem:[%s569_s1 + $0x29] sm:$0x7] %v189_v45  }
  0x34   :  { %320 = vst [vmem:[%s569_s1 + $0x31] sm:$0x7] %v193_v46  }
  0x35   :  { %321 = vst [vmem:[%s569_s1 + $0x39] sm:$0x7] %v197_v47  }
  0x36   :  { %322 = vst [vmem:[%s569_s1 + $0x24] sm:$0x7] %v201_v48  }
  0x37   :  { %323 = vst [vmem:[%s569_s1 + $0x2c] sm:$0x7] %v205_v49  }
  0x38   :  { %324 = vst [vmem:[%s569_s1 + $0x34] sm:$0x7] %v209_v50  }
  0x39   :  { %325 = vst [vmem:[%s569_s1 + $0x3c] sm:$0x7] %v213_v51  }
  0x3a   :  { %326 = vst [vmem:[%s569_s1 + $0x27] ss:$25 sm:$0x3] %v217_v52  }
  0x3b   :  { %327 = vst [vmem:[%s569_s1 + $0x3f] sm:$0x4] %v217_v52  }
  0x3c   :  { %328 = vst [vmem:[%s569_s1 + $0x2f] ss:$25 sm:$0x3] %v223_v53  }
  0x3d   :  { %329 = vst [vmem:[%s569_s1 + $0x47] sm:$0x4] %v223_v53  }
  0x3e   :  { %330 = vst [vmem:[%s569_s1 + $0x37] ss:$25 sm:$0x3] %v229_v54  }
  0x3f   :  { %331 = vst [vmem:[%s569_s1 + $0x4f] sm:$0x4] %v229_v54  }
  0x40   :  { %332 = vst [vmem:[%s569_s1 + $0x3f] ss:$25 sm:$0x3] %v235_v55  }
  0x41   :  { %333 = vst [vmem:[%s569_s1 + $0x57] sm:$0x4] %v235_v55  }
  0x42   :  { %334 = vst [vmem:[%s569_s1 + $0x42] sm:$0x7] %v241_v56  }
  0x43   :  { %335 = vst [vmem:[%s569_s1 + $0x4a] sm:$0x7] %v245_v57  }
  0x44   :  { %336 = vst [vmem:[%s569_s1 + $0x52] sm:$0x7] %v249_v58  }
  0x45   :  { %337 = vst [vmem:[%s569_s1 + $0x5a] sm:$0x7] %v253_v59  }
  0x46   :  { %338 = vst [vmem:[%s569_s1 + $0x45] sm:$0x7] %v257_v60  }
  0x47   :  { %339 = vst [vmem:[%s569_s1 + $0x4d] sm:$0x7] %v261_v61  }
  0x48   :  { %340 = vst [vmem:[%s569_s1 + $0x55] sm:$0x7] %v265_v62  }
  0x49   :  { %341 = vst [vmem:[%s569_s1 + $0x5d] sm:$0x7] %v269_v63  }

// kernel: tile.28
= control target key start
LH: loop header
LB: loop body
LE: loop exit
PB: predicated region body
PF: predicated region fallthrough
CT: control target
= control target key end

     0   :  { %s440_s0 = inlined_call_operand.vmem [shape: f32[6,3,512], index: 0, kind: input, shape index: {}]   ;;  %s441_s1 = inlined_call_operand.vmem [shape: f32[18,512], index: 1, kind: output, shape index: {}]  }
   0x1   :  { %v208_v0 = vld [vmem:[%s440_s0 + $0x5c] sm:$0xf]  ;;  %v209_v1 = vld [vmem:[%s440_s0 + $0x58] sm:$0xf]  ;;  %v210_v2 = vld [vmem:[%s440_s0 + $0x54] sm:$0xf] }
   0x2   :  { %7 = vst [vmem:[#allocation0 + $0x8] sm:$0xf] %v208_v0  ;;  %v211_v3 = vld [vmem:[%s440_s0 + $0x50] sm:$0xf]  ;;  %v212_v4 = vld [vmem:[%s440_s0 + $0x4c] sm:$0xf] }
   0x3   :  { %11 = vst [vmem:[#allocation0 + $0xb8] sm:$0xf] %v209_v1  ;;  %v213_v5 = vld [vmem:[%s440_s0 + $0x48] sm:$0xf]  ;;  %v214_v6 = vld [vmem:[%s440_s0 + $0x44] sm:$0xf] }
   0x4   :  { %15 = vst [vmem:[#allocation0 + $0xa8] sm:$0xf] %v210_v2  ;;  %v215_v7 = vld [vmem:[%s440_s0 + $0x40] sm:$0xf]  ;;  %v216_v8 = vld [vmem:[%s440_s0 + $0x3c] sm:$0xf] }
   0x5   :  { %19 = vst [vmem:[#allocation0 + $0x70] sm:$0xf] %v211_v3  ;;  %v217_v9 = vld [vmem:[%s440_s0 + $0x38] sm:$0xf]  ;;  %v218_v10 = vld [vmem:[%s440_s0 + $0x34] sm:$0xf] }
   0x6   :  { %23 = vst [vmem:[#allocation0 + $0x58] sm:$0xf] %v212_v4  ;;  %v219_v11 = vld [vmem:[%s440_s0 + $0x30] sm:$0xf]  ;;  %v220_v12 = vld [vmem:[%s440_s0 + $0x2c] sm:$0xf] }
   0x7   :  { %27 = vst [vmem:[#allocation0 + $0x90] sm:$0xf] %v213_v5  ;;  %v221_v13 = vld [vmem:[%s440_s0 + $0x28] sm:$0xf]  ;;  %v222_v14 = vld [vmem:[%s440_s0 + $0x24] sm:$0xf] }
   0x8   :  { %31 = vst [vmem:[#allocation0 + $0x78] sm:$0xf] %v214_v6  ;;  %v223_v15 = vld [vmem:[%s440_s0 + $0x20] sm:$0xf]  ;;  %v224_v16 = vld [vmem:[%s440_s0 + $0x1c] sm:$0xf] }
   0x9   :  { %35 = vst [vmem:[#allocation0 + $0x40] sm:$0xf] %v215_v7  ;;  %v225_v17 = vld [vmem:[%s440_s0 + $0x18] sm:$0xf]  ;;  %v226_v18 = vld [vmem:[%s440_s0 + $0x14] sm:$0xf] }
   0xa   :  { %39 = vst [vmem:[#allocation0 + $0x30] sm:$0xf] %v216_v8  ;;  %v227_v19 = vld [vmem:[%s440_s0 + $0x10] sm:$0xf]  ;;  %v228_v20 = vld [vmem:[%s440_s0 + $0xc] sm:$0xf] }
   0xb   :  { %43 = vst [vmem:[#allocation0 + $0x28] sm:$0xf] %v217_v9  ;;  %v229_v21 = vld [vmem:[%s440_s0 + $0x8] sm:$0xf]  ;;  %v230_v22 = vld [vmem:[%s440_s0 + $0x4] sm:$0xf] }
   0xc   :  { %47 = vst [vmem:[#allocation0 + $0xa0] sm:$0xf] %v218_v10  ;;  %v96_v23 = vld [vmem:[%s440_s0] sm:$0xf]  ;;  %v185_v44 = vld [vmem:[#allocation0 + $0x70] sm:$0x7]  }
   0xd   :  { %51 = vst [vmem:[#allocation0 + $0x20] sm:$0xf] %v219_v11  ;;  %v181_v43 = vld [vmem:[#allocation0 + $0x58] sm:$0x7]   ;;  %v191_v45 = vld [vmem:[#allocation0 + $0xa8] sm:$0x7]  }
   0xe   :  { %55 = vst [vmem:[#allocation0 + $0x80] sm:$0xf] %v220_v12  ;;  %v177_v42 = vld [vmem:[#allocation0 + $0x90] sm:$0x7]   ;;  %v197_v46 = vld [vmem:[#allocation0 + $0xb8] sm:$0x7]  }
   0xf   :  { %59 = vst [vmem:[#allocation0 + $0x68] sm:$0xf] %v221_v13  ;;  %v173_v41 = vld [vmem:[#allocation0 + $0x78] sm:$0x7]   ;;  %v203_v47 = vld [vmem:[#allocation0 + $0x8] sm:$0x7]  }
  0x10   :  { %63 = vst [vmem:[#allocation0 + $0x48] sm:$0xf] %v222_v14  ;;  %v169_v40 = vld [vmem:[#allocation0 + $0x40] sm:$0x7]  }
  0x11   :  { %67 = vst [vmem:[#allocation0 + $0x18] sm:$0xf] %v223_v15  ;;  %v165_v39 = vld [vmem:[#allocation0 + $0x30] sm:$0x7]  }
  0x12   :  { %71 = vst [vmem:[#allocation0 + $0x10] sm:$0xf] %v224_v16  ;;  %v161_v38 = vld [vmem:[#allocation0 + $0x28] sm:$0x7]  }
  0x13   :  { %75 = vst [vmem:[#allocation0 + $0x50] sm:$0xf] %v225_v17  ;;  %v157_v37 = vld [vmem:[#allocation0 + $0xa0] sm:$0x7]  }
  0x14   :  { %79 = vst [vmem:[#allocation0 + $0x88] sm:$0xf] %v226_v18  ;;  %v153_v36 = vld [vmem:[#allocation0 + $0x20] sm:$0x7]  }
  0x15   :  { %83 = vst [vmem:[#allocation0 + $0x60] sm:$0xf] %v227_v19  ;;  %v147_v35 = vld [vmem:[#allocation0 + $0x80] sm:$0x7]  }
  0x16   :  { %87 = vst [vmem:[#allocation0 + $0x38] sm:$0xf] %v228_v20  ;;  %v141_v34 = vld [vmem:[#allocation0 + $0x68] sm:$0x7]  }
  0x17   :  { %91 = vst [vmem:[#allocation0] sm:$0xf] %v229_v21  ;;  %v135_v33 = vld [vmem:[#allocation0 + $0x48] sm:$0x7]  }
  0x18   :  { %95 = vst [vmem:[#allocation0 + $0x98] sm:$0xf] %v230_v22  ;;  %v129_v31 = vld [vmem:[#allocation0 + $0x18] sm:$0x7]  }
  0x19   :  { %97 = vst [vmem:[#allocation0 + $0xb0] sm:$0xf] %v96_v23  ;;  %v125_v24 = vld [vmem:[#allocation0 + $0x10] sm:$0x7]  }
  0x1a   :  { %v121_v25 = vld [vmem:[#allocation0 + $0x50] sm:$0x7]   ;;  %237 = vst [vmem:[%s441_s1 + $0x1b] sm:$0x7] %v125_v24  }
  0x1b   :  { %v117_v26 = vld [vmem:[#allocation0 + $0x88] sm:$0x7]   ;;  %236 = vst [vmem:[%s441_s1 + $0x13] sm:$0x7] %v121_v25  }
  0x1c   :  { %v113_v27 = vld [vmem:[#allocation0 + $0x60] sm:$0x7]   ;;  %235 = vst [vmem:[%s441_s1 + $0xb] sm:$0x7] %v117_v26  }
  0x1d   :  { %v109_v28 = vld [vmem:[#allocation0 + $0x38] sm:$0x7]   ;;  %234 = vst [vmem:[%s441_s1 + $0x3] sm:$0x7] %v113_v27  }
  0x1e   :  { %v105_v29 = vld [vmem:[#allocation0] sm:$0x7]   ;;  %233 = vst [vmem:[%s441_s1 + $0x18] sm:$0x7] %v109_v28  }
  0x1f   :  { %v101_v30 = vld [vmem:[#allocation0 + $0x98] sm:$0x7]   ;;  %232 = vst [vmem:[%s441_s1 + $0x10] sm:$0x7] %v105_v29  }
  0x20   :  { %v98_v32 = vld [vmem:[#allocation0 + $0xb0] sm:$0x7]   ;;  %231 = vst [vmem:[%s441_s1 + $0x8] sm:$0x7] %v101_v30  }
  0x21   :  { %99 = vst [vmem:[%s441_s1] sm:$0x7] %v98_v32  }
  0x22   :  { %238 = vst [vmem:[%s441_s1 + $0x6] sm:$0x3] %v129_v31  }
  0x23   :  { %239 = vst [vmem:[%s441_s1 + $0x1e] sm:$0x4] %v129_v31  }
  0x24   :  { %240 = vst [vmem:[%s441_s1 + $0xe] sm:$0x3] %v135_v33  }
  0x25   :  { %241 = vst [vmem:[%s441_s1 + $0x26] sm:$0x4] %v135_v33  }
  0x26   :  { %242 = vst [vmem:[%s441_s1 + $0x16] sm:$0x3] %v141_v34  }
  0x27   :  { %243 = vst [vmem:[%s441_s1 + $0x2e] sm:$0x4] %v141_v34  }
  0x28   :  { %244 = vst [vmem:[%s441_s1 + $0x1e] sm:$0x3] %v147_v35  }
  0x29   :  { %245 = vst [vmem:[%s441_s1 + $0x36] sm:$0x4] %v147_v35  }
  0x2a   :  { %246 = vst [vmem:[%s441_s1 + $0x21] sm:$0x7] %v153_v36  }
  0x2b   :  { %247 = vst [vmem:[%s441_s1 + $0x29] sm:$0x7] %v157_v37  }
  0x2c   :  { %248 = vst [vmem:[%s441_s1 + $0x31] sm:$0x7] %v161_v38  }
  0x2d   :  { %249 = vst [vmem:[%s441_s1 + $0x39] sm:$0x7] %v165_v39  }
  0x2e   :  { %250 = vst [vmem:[%s441_s1 + $0x24] sm:$0x7] %v169_v40  }
  0x2f   :  { %251 = vst [vmem:[%s441_s1 + $0x2c] sm:$0x7] %v173_v41  }
  0x30   :  { %252 = vst [vmem:[%s441_s1 + $0x34] sm:$0x7] %v177_v42  }
  0x31   :  { %253 = vst [vmem:[%s441_s1 + $0x3c] sm:$0x7] %v181_v43  }
  0x32   :  { %254 = vst [vmem:[%s441_s1 + $0x27] ss:$25 sm:$0x3] %v185_v44  }
  0x33   :  { %255 = vst [vmem:[%s441_s1 + $0x3f] sm:$0x4] %v185_v44  }
  0x34   :  { %256 = vst [vmem:[%s441_s1 + $0x2f] ss:$25 sm:$0x3] %v191_v45  }
  0x35   :  { %257 = vst [vmem:[%s441_s1 + $0x47] sm:$0x4] %v191_v45  }
  0x36   :  { %258 = vst [vmem:[%s441_s1 + $0x37] ss:$25 sm:$0x3] %v197_v46  }
  0x37   :  { %259 = vst [vmem:[%s441_s1 + $0x4f] sm:$0x4] %v197_v46  }
  0x38   :  { %260 = vst [vmem:[%s441_s1 + $0x3f] ss:$25 sm:$0x3] %v203_v47  }
  0x39   :  { %261 = vst [vmem:[%s441_s1 + $0x57] sm:$0x4] %v203_v47  }

// kernel: squeeze.4
= control target key start
LH: loop header
LB: loop body
LE: loop exit
PB: predicated region body
PF: predicated region fallthrough
CT: control target
= control target key end

     0   :  { %vm7_vm0 = vcmask 31744   ;;  %s39_s0 = inlined_call_operand.vmem [shape: f32[8], index: 0, kind: input, shape index: {}]   ;;  %s40_s1 = inlined_call_operand.vmem [shape: f32[2,4], index: 1, kind: output, shape index: {}]  }
   0x1   :  { %v4_v0 = vld [vmem:[%s39_s0] sm:$0x1]  ;;  %s22_s0 = smov 124  }
   0x2   :  { %5 = vst [vmem:[#allocation1] sm:$0x1] %v4_v0 }
   0x9   :  { %v9_v1 = vld [vmem:[#allocation1] sm:$0x1]  }
   0xa   :  { %v6_v2 = vld [vmem:[#allocation1] sm:$0x1]   ;;  %10 = vrot.lane.b32.xlu0 %v9_v1, %s22_s0 }
   0xb   :  { %8 = vst.msk [vmem:[#allocation0] sm:$0x1] %vm7_vm0, %v6_v2  }
  0x7c   :  { %v11_v3 = vpop.permute.xlu0 %10  }
  0x7d   :  { %14 = vst.msk [vmem:[#allocation0 + $0x1] sm:$0x1] %vm7_vm0, %v11_v3  }
  0x84   :  { %v17_v4 = vld [vmem:[#allocation0] sm:$0x3] }
  0x85   :  { %20 = vst [vmem:[%s40_s1] sm:$0x3] %v17_v4 }

// kernel: tdn_hc_san_forward.1
= control target key start
LH: loop header
LB: loop body
LE: loop exit
PB: predicated region body
PF: predicated region fallthrough
CT: control target
= control target key end

     0   :  { %s1426_s18 = smov 0   ;;  %s1428_s19 = smov 0   ;;  %s1839_s0 = inlined_call_operand.vmem [shape: f32[24,256], index: 0, kind: input, shape index: {}]   ;;  %s1840_s1 = inlined_call_operand.vmem [shape: f32[18,256], index: 1, kind: input, shape index: {}]   ;;  %s1841_s2 = inlined_call_operand.vmem [shape: f32[24,512], index: 2, kind: input, shape index: {}]   ;;  %s1842_s3 = inlined_call_operand.vmem [shape: f32[18,512], index: 3, kind: input, shape index: {}]   ;;  %s1843_s4 = inlined_call_operand.vmem [shape: f32[16,42], index: 4, kind: input, shape index: {}]   ;;  %s1844_s5 = inlined_call_operand.vmem [shape: f32[512,32], index: 5, kind: input, shape index: {}]   ;;  %s1845_s6 = inlined_call_operand.vmem [shape: f32[2,32], index: 6, kind: input, shape index: {}]   ;;  %s1846_s7 = inlined_call_operand.vmem [shape: f32[2,16], index: 7, kind: input, shape index: {}]   ;;  %s1847_s8 = inlined_call_operand.vmem [shape: f32[1,2], index: 8, kind: input, shape index: {}]   ;;  %s1848_s9 = inlined_call_operand.vmem [shape: f32[8,1], index: 9, kind: input, shape index: {}]   ;;  %s1849_s10 = inlined_call_operand.vmem [shape: f32[8,8], index: 10, kind: input, shape index: {}]   ;;  %s1850_s11 = inlined_call_operand.vmem [shape: f32[32,48], index: 11, kind: input, shape index: {}]   ;;  %s1851_s12 = inlined_call_operand.vmem [shape: f32[1,48], index: 12, kind: input, shape index: {}]   ;;  %s1852_s13 = inlined_call_operand.vmem [shape: f32[8,48], index: 13, kind: input, shape index: {}]   ;;  %s1853_s14 = inlined_call_operand.vmem [shape: f32[8,1], index: 14, kind: input, shape index: {}]   ;;  %s1854_s15 = inlined_call_operand.vmem [shape: f32[8,128], index: 15, kind: output, shape index: {}]  }
   0x1   :  { %s1430_s20 = smov 0  }
   0x2 LB: > { %s1443_s22 = sadd.s32 1, %s1336_s20   ;;  %s32_s24 = sadd.s32 1, %s1332_s19  ;;  %s1336_s20 = sphi %s1430_s20, %s1862_s20   ;;  %s1332_s19 = sphi %s1428_s19, %s1865_s19   ;;  %s1328_s18 = sphi %s1426_s18, %s1864_s18  }
   0x3   : > { %1857 = sst [smem:[#allocation6_spill]] %s1443_s22  ;;  %s29_s23 = ssub.s32 %s1336_s20, %s1443_s22 }
   0x4   : > { %p30_p0 = scmp.eq.s32.totalorder %s29_s23, 0  ;;  %p39_p1 = scmp.ne.s32.totalorder %s1332_s19, %s1328_s18 }
   0x5   : > { %p40_p2 = scmp.eq.s32.totalorder %s1336_s20, 0  ;;  %p1242_p4 = scmp.ge.s32.totalorder %s1336_s20, 2 }
   0x6   : > { %s1452_s25 = scalar_select %p30_p0, %s1332_s19, %s32_s24  }
   0x7   : > { %p1454_p3 = por %p40_p2, %p39_p1  ;;  %424 = sbr.rel (%p1242_p4) target bundleno = 26 (0x1a), region = 68 }
   0x8   : > { %1858 = sst [smem:[#allocation7_spill]] %s1452_s25 }
   0xc   : > { %427 = sbr.rel (!%p1454_p3) target bundleno = 19 (0x13), region = 72  ;;  %s429_s27 = sand.u32 (%p1454_p3), 1, %s1332_s19  }
   0xd   : > { %s1243_s28 = sshll.u32 (%p1454_p3), %s1336_s20, 3  ;;  %s1266_s29 = smul.u32 (%p1454_p3), 24, %s429_s27 }
   0xe   : > { %s433_s17 = scalar_lea.vmem (%p1454_p3), %s1839_s0, %s1243_s28 }
   0xf   : > { %v466_v0 = vld [vmem:[%s433_s17] sm:$0xff] (%p1454_p3)  ;;  %v468_v1 = vld [vmem:[%s433_s17 + $0x10] sm:$0xff] (%p1454_p3)  ;;  %s431_s23 = scalar_lea.vmem (%p1454_p3), [#allocation4], %s1266_s29 }
  0x10   : > { %v470_v2 = vld [vmem:[%s433_s17 + $0x20] sm:$0xff] (%p1454_p3)  ;;  %467 = vst [vmem:[%s431_s23] sm:$0xff] (%p1454_p3), %v466_v0 }
  0x11   : > { %469 = vst [vmem:[%s431_s23 + $0x8] sm:$0xff] %v468_v1 }
  0x12   : > { %471 = vst [vmem:[%s431_s23 + $0x10] sm:$0xff] %v470_v2 }
  0x13 PF: > { %477 = sbr.rel (!%p1454_p3) target bundleno = 26 (0x1a), region = 110  ;;  %s479_s24 = sand.u32 (%p1454_p3), 1, %s1332_s19  }
  0x14   : > { %s1244_s21 = sshll.u32 (%p1454_p3), %s1336_s20, 3  ;;  %s1267_s27 = smul.u32 (%p1454_p3), 24, %s479_s24 }
  0x15   : > { %s483_s28 = scalar_lea.vmem (%p1454_p3), %s1840_s1, %s1244_s21 }
  0x16   : > { %v516_v3 = vld [vmem:[%s483_s28] sm:$0xff] (%p1454_p3)  ;;  %v518_v4 = vld [vmem:[%s483_s28 + $0x10] sm:$0xff] (%p1454_p3)  ;;  %s481_s29 = scalar_lea.vmem (%p1454_p3), [#allocation5], %s1267_s27 }
  0x17   : > { %v520_v5 = vld [vmem:[%s483_s28 + $0x20] sm:$0xff] (%p1454_p3)  ;;  %517 = vst [vmem:[%s481_s29] sm:$0xff] (%p1454_p3), %v516_v3 }
  0x18   : > { %519 = vst [vmem:[%s481_s29 + $0x8] sm:$0xff] %v518_v4 }
  0x19   : > { %521 = vst [vmem:[%s481_s29 + $0x10] sm:$0xff] %v520_v5 }
  0x1a PF: > { %p1245_p5 = scmp.ge.s32.totalorder %s1336_s20, 1  ;;  %p526_p6 = scmp.lt.s32.totalorder %s1336_s20, 3 }
  0x1c   : > { %p527_p7 = pnand %p1245_p5, %p526_p6 }
  0x1d   : > { %s533_s26 = sand.u32 (!%p527_p7), 1, %s1328_s18   ;;  %s1860_s25 = sadd.s32 (!%p527_p7), 4294967295, %s1336_s20  }
  0x1e   : > { %530 = sbr.rel (%p527_p7) target bundleno = 1490 (0x5d2), region = 148  ;;  %p1246_p8 = scmp.ne.s32.totalorder (!%p527_p7), %s1860_s25, 0 }
  0x1f   : > { %s1268_s30 = smul.u32 (!%p527_p7), 24, %s533_s26 }
  0x21   : > { %s535_s22 = scalar_lea.vmem (!%p527_p7), [#allocation4], %s1268_s30  ;;  %s542_s21 = scalar_lea.vmem (!%p527_p7), [#allocation5], %s1268_s30 }
  0x23   : > { %589 = sbr.rel (%p1246_p8) target bundleno = 47 (0x2f), region = 160 }
  0x28   : > { %vm590_vm0 = vcmask 7168   ;;  %v1338_v6 = vmov 0.0   ;;  %vm596_vm1 = vcmask 1024  }
  0x29   : > { %591 = vst.msk [vmem:[#allocation2] sm:$0xff] %vm590_vm0, %v1338_v6 }
  0x2a   : > { %592 = vst.msk [vmem:[#allocation2 + $0x8] sm:$0xff] %vm590_vm0, %v1338_v6 }
  0x2b   : > { %593 = vst.msk [vmem:[#allocation2 + $0x10] sm:$0xff] %vm590_vm0, %v1338_v6 }
  0x2c   : > { %594 = vst.msk [vmem:[#allocation3] sm:$0xff] %vm590_vm0, %v1338_v6 }
  0x2d   : > { %595 = vst.msk [vmem:[#allocation3 + $0x8] sm:$0xff] %vm590_vm0, %v1338_v6 }
  0x2e   : > { %597 = vst.msk [vmem:[#allocation3 + $0x10] sm:$0x3] %vm596_vm1, %v1338_v6 }
  0x2f PF: > { %v621_v7 = vld [vmem:[%s542_s21 + $0x8] sm:$0xff]  ;;  %v603_v8 = vld [vmem:[%s535_s22 + $0x10] sm:$0xff]  ;;  %v601_v9 = vld [vmem:[%s535_s22] sm:$0xff]  ;;  %vm627_vm2 = vcmask 1041408   ;;  %vm613_vm3 = vcmask 7168   ;;  %vm636_vm4 = vcmask 1024  }
  0x30   : > { %625 = vadd.xlane.f32.xlu2 %v621_v7  ;;  %608 = vadd.xlane.f32.xlu1 %v603_v8  ;;  %v622_v10 = vld [vmem:[%s542_s21 + $0x10] sm:$0x3]  ;;  %v620_v12 = vld [vmem:[%s542_s21] sm:$0xff]  ;;  %v602_v13 = vld [vmem:[%s535_s22 + $0x8] sm:$0xff]  ;;  %s1861_s18 = sadd.s32 4294967295, %s1336_s20  }
  0x31   : > { %604 = vadd.xlane.f32.xlu0 %v601_v9  ;;  %v628_v11 = vsel %vm627_vm2, %v622_v10, 0.0  ;;  %v598_v16 = vld [vmem:[#allocation2] sm:$0xff]  ;;  %v599_v25 = vld [vmem:[#allocation2 + $0x8] sm:$0xff]  ;;  %p1247_p9 = scmp.ne.s32.totalorder %s1861_s18, 1 }
  0x32   : > { %v600_v15 = vld [vmem:[#allocation2 + $0x10] sm:$0xff]  ;;  %s1340_s17 = smov (!%p1247_p9), 16   ;;  %s1341_s23 = smov (!%p1247_p9), 96  }
  0x33   : > { %v617_v24 = vld [vmem:[#allocation3] sm:$0xff]  ;;  %s1342_s24 = smov (!%p1247_p9), 112   ;;  %s1343_s29 = smov (!%p1247_p9), 32  }
  0x34   : > { %v618_v14 = vld [vmem:[#allocation3 + $0x8] sm:$0xff]  ;;  %s1344_s25 = smov (!%p1247_p9), 49  }
  0x35   : > { %v619_v23 = vld [vmem:[#allocation3 + $0x10] sm:$0x3] }
  0x38   : > { %629 = vadd.xlane.f32.xlu2 %v628_v11  ;;  %623 = vadd.xlane.f32.xlu1 %v620_v12 }
  0x39   : > { %606 = vadd.xlane.f32.xlu0 %v602_v13 }
  0xa3   : > { %v626_v17 = vpop.xlane.xlu2 %625  ;;  %v609_v18 = vpop.xlane.xlu1 %608 }
  0xa4   : > { %v632_v19 = vadd.f32 %v626_v17, %v618_v14  ;;  %v612_v20 = vadd.f32 %v609_v18, %v600_v15  ;;  %v605_v21 = vpop.xlane.xlu0 %604 }
  0xa5   : > { %v610_v22 = vadd.f32 %v605_v21, %v598_v16 }
  0xa6   : > { %635 = vst.msk [vmem:[#allocation3 + $0x8] sm:$0xff] %vm613_vm3, %v632_v19 }
  0xa7   : > { %616 = vst.msk [vmem:[#allocation2 + $0x10] sm:$0xff] %vm613_vm3, %v612_v20 }
  0xa8   : > { %614 = vst.msk [vmem:[#allocation2] sm:$0xff] %vm613_vm3, %v610_v22 }
  0xab   : > { %v630_v26 = vpop.xlane.xlu2 %629  ;;  %v624_v27 = vpop.xlane.xlu1 %623 }
  0xac   : > { %v633_v28 = vadd.f32 %v630_v26, %v619_v23  ;;  %v631_v29 = vadd.f32 %v624_v27, %v617_v24  ;;  %v607_v30 = vpop.xlane.xlu0 %606  ;;  %641 = sbr.rel (%p1247_p9) target bundleno = 1490 (0x5d2), region = 164 }
  0xad   : > { %v611_v31 = vadd.f32 %v607_v30, %v599_v25 }
  0xae   : > { %637 = vst.msk [vmem:[#allocation3 + $0x10] sm:$0x3] %vm636_vm4, %v633_v28 }
  0xaf   : > { %634 = vst.msk [vmem:[#allocation3] sm:$0xff] %vm613_vm3, %v631_v29 }
  0xb0   : > { %615 = vst.msk [vmem:[#allocation2 + $0x8] sm:$0xff] %vm613_vm3, %v611_v31 }
  0xb1   : > { %v1339_v34 = vmov 0   ;;  %v688_v38 = vld [vmem:[#allocation3 + $0x8] sm:$0xff]  ;;  %v644_v40 = vld [vmem:[#allocation2 + $0x10] sm:$0xff]  ;;  %v702_v47 = vld [vmem:[%s1842_s3 + $0x48] sm:$0x3]  ;;  %vm734_vm5 = vcmask 343040  }
  0xb2   : > { %1302 = vset.pattern.permute.xlu1 %v1339_v34  ;;  %1301 = vset.pattern.permute.xlu0 %v1339_v34  ;;  %v642_v41 = vld [vmem:[#allocation2] sm:$0xff]  ;;  %v691_v42 = vmul.f32 0.00390625, %v688_v38  ;;  %v647_v43 = vmul.f32 0.00390625, %v644_v40  ;;  %v703_v48 = vld [vmem:[%s1842_s3 + $0x50] sm:$0x3]  ;;  %v698_v58 = vld [vmem:[%s1842_s3 + $0x28] sm:$0xff] }
  0xb3   : > { %1303 = vset.pattern.permute.xlu2 %v1339_v34  ;;  %v645_v44 = vmul.f32 0.00390625, %v642_v41  ;;  %v1011_v45 = vld [vmem:[%s1848_s9] sm:$0xff]  ;;  %v704_v49 = vld [vmem:[%s1842_s3 + $0x58] sm:$0x3]  ;;  %v699_v59 = vld [vmem:[%s1842_s3 + $0x30] sm:$0xff]  ;;  %vm1054_vm6 = vcmask 261120  }
  0xb4   : > { %v701_v46 = vld [vmem:[%s1842_s3 + $0x40] sm:$0x3]  ;;  %v700_v60 = vld [vmem:[%s1842_s3 + $0x38] sm:$0xff]  ;;  %v694_v63 = vld [vmem:[%s1842_s3 + $0x8] sm:$0xff]  ;;  %vm1021_vm7 = vcmask 130048   ;;  %vm1109_vm9 = vcmask 64512  }
  0xb5   : > { %v689_v33 = vld [vmem:[#allocation3 + $0x10] sm:$0x3]  ;;  %v697_v57 = vld [vmem:[%s1842_s3 + $0x20] sm:$0xff]  ;;  %v695_v4 = vld [vmem:[%s1842_s3 + $0x10] sm:$0xff]  ;;  %vm1162_vm10 = vcmask 392192   ;;  %vm1181_vm11 = vcmask 400384  }
  0xb6   : > { %v687_v32 = vld [vmem:[#allocation3] sm:$0xff]  ;;  %v692_v36 = vmul.f32 0.00390625, %v689_v33  ;;  %v693_v62 = vld [vmem:[%s1842_s3] sm:$0xff]  ;;  %v657_v8 = vld [vmem:[%s1841_s2 + $0x48] sm:$0xff]  ;;  %vm1183_vm12 = vcmask 408576   ;;  %vm1185_vm13 = vcmask 416768  }
  0xb7   : > { %v690_v35 = vmul.f32 0.00390625, %v687_v32  ;;  %v643_v37 = vld [vmem:[#allocation2 + $0x8] sm:$0xff]  ;;  %v696_v5 = vld [vmem:[%s1842_s3 + $0x18] sm:$0xff]  ;;  %v656_v7 = vld [vmem:[%s1841_s2 + $0x40] sm:$0xff] }
  0xb8   : > { %v646_v39 = vmul.f32 0.00390625, %v643_v37  ;;  %717 = vperm.xlu0 %1301, %v692_v36   ;;  %v658_v11 = vld [vmem:[%s1841_s2 + $0x50] sm:$0xff]  ;;  %v659_v12 = vld [vmem:[%s1841_s2 + $0x58] sm:$0xff]  ;;  %v652_v15 = vld [vmem:[%s1841_s2 + $0x20] sm:$0xff] }
  0xb9   : > { %707 = vperm.xlu1 %1302, %v690_v35   ;;  %v653_v16 = vld [vmem:[%s1841_s2 + $0x28] sm:$0xff]  ;;  %v654_v19 = vld [vmem:[%s1841_s2 + $0x30] sm:$0xff]  ;;  %v655_v20 = vld [vmem:[%s1841_s2 + $0x38] sm:$0xff] }
  0xba   : > { %667 = vperm.xlu2 %1303, %v646_v39   ;;  %v648_v24 = vld [vmem:[%s1841_s2] sm:$0xff]  ;;  %v649_v25 = vld [vmem:[%s1841_s2 + $0x8] sm:$0xff]  ;;  %v650_v28 = vld [vmem:[%s1841_s2 + $0x10] sm:$0xff] }
  0xbb   : > { %v651_v29 = vld [vmem:[%s1841_s2 + $0x18] sm:$0xff]  ;;  %v732_v36 = vld [vmem:[%s1843_s4] sm:$0xff]  ;;  %v891_v41 = vld [vmem:[%s1844_s5 + $0x170] sm:$0xff] }
  0xbc   : > { %v892_v37 = vld [vmem:[%s1844_s5 + $0x178] sm:$0xff] }
  0xbd   : > { %v908_v38 = vld [vmem:[%s1844_s5 + $0x1f8] sm:$0xff] }
  0xbe   : > { %v860_v39 = vld [vmem:[%s1844_s5 + $0x78] sm:$0xff] }
  0xbf   : > { %v876_v40 = vld [vmem:[%s1844_s5 + $0xf8] sm:$0xff] }
  0xc0   : > { %712 = vperm.xlu0 %1301, %v691_v42   ;;  %v907_v42 = vld [vmem:[%s1844_s5 + $0x1f0] sm:$0xff] }
  0xc1   : > { %672 = vperm.xlu1 %1302, %v647_v43   ;;  %v859_v43 = vld [vmem:[%s1844_s5 + $0x70] sm:$0xff] }
  0xc2   : > { %662 = vperm.xlu2 %1303, %v645_v44   ;;  %v875_v44 = vld [vmem:[%s1844_s5 + $0xf0] sm:$0xff] }
  0xc8   : > { %1014 = vperm.xlu0 %1301, %v1011_v45   ;;  %v890_v45 = vld [vmem:[%s1844_s5 + $0x168] sm:$0xff] }
 0x114   : > { %v668_v56 = vpop.permute.xlu2 %667 }
 0x115   : > { %v679_v26 = vmul.f32 %v668_v56, %v652_v15  ;;  %v680_v27 = vmul.f32 %v668_v56, %v653_v16  ;;  %v681_v30 = vmul.f32 %v668_v56, %v654_v19  ;;  %v682_v31 = vmul.f32 %v668_v56, %v655_v20  ;;  %v856_v56 = vld [vmem:[%s1844_s5 + $0x58] sm:$0xff]  ;;  %v898_v15 = vld [vmem:[%s1844_s5 + $0x1a8] sm:$0xff]  ;;  %v897_v19 = vld [vmem:[%s1844_s5 + $0x1a0] sm:$0xff] }
 0x116   : > { %v850_v16 = vld [vmem:[%s1844_s5 + $0x28] sm:$0xff]  ;;  %v849_v20 = vld [vmem:[%s1844_s5 + $0x20] sm:$0xff] }
 0x11c   : > { %v663_v21 = vpop.permute.xlu2 %662 }
 0x11d   : > { %v675_v32 = vmul.f32 %v663_v21, %v648_v24  ;;  %v676_v33 = vmul.f32 %v663_v21, %v649_v25  ;;  %v677_v34 = vmul.f32 %v663_v21, %v650_v28  ;;  %v678_v35 = vmul.f32 %v663_v21, %v651_v29  ;;  %v865_v21 = vld [vmem:[%s1844_s5 + $0xa0] sm:$0xff]  ;;  %v848_v24 = vld [vmem:[%s1844_s5 + $0x18] sm:$0xff]  ;;  %v878_v28 = vld [vmem:[%s1844_s5 + $0x108] sm:$0xff] }
 0x11e   : > { %v864_v25 = vld [vmem:[%s1844_s5 + $0x98] sm:$0xff]  ;;  %v847_v29 = vld [vmem:[%s1844_s5 + $0x10] sm:$0xff] }
 0x12a   : > { %v718_v51 = vpop.permute.xlu0 %717 }
 0x12b   : > { %v708_v50 = vpop.permute.xlu1 %707  ;;  %v728_v52 = vmul.f32 %v718_v51, %v701_v46  ;;  %v729_v53 = vmul.f32 %v718_v51, %v702_v47  ;;  %v730_v54 = vmul.f32 %v718_v51, %v703_v48  ;;  %v731_v55 = vmul.f32 %v718_v51, %v704_v49  ;;  %v906_v46 = vld [vmem:[%s1844_s5 + $0x1e8] sm:$0xff]  ;;  %v905_v51 = vld [vmem:[%s1844_s5 + $0x1e0] sm:$0xff] }
 0x12c   : > { %v720_v9 = vmul.f32 %v708_v50, %v693_v62  ;;  %v721_v10 = vmul.f32 %v708_v50, %v694_v63  ;;  %v722_v13 = vmul.f32 %v708_v50, %v695_v4  ;;  %v723_v14 = vmul.f32 %v708_v50, %v696_v5  ;;  %v858_v47 = vld [vmem:[%s1844_s5 + $0x68] sm:$0xff]  ;;  %v889_v50 = vld [vmem:[%s1844_s5 + $0x160] sm:$0xff] }
 0x12d   : > { %1248 = vmatpush.msk.msra.mxu0 %vm627_vm2, %v728_v52  ;;  %1251 = vmatpush.msk.msra.mxu1 %vm627_vm2, %v729_v53  ;;  %v874_v48 = vld [vmem:[%s1844_s5 + $0xe8] sm:$0xff]  ;;  %v857_v52 = vld [vmem:[%s1844_s5 + $0x60] sm:$0xff] }
 0x12e   : > { %1254 = vmatpush.msk.msra.mxu2 %vm627_vm2, %v730_v54  ;;  %1257 = vmatpush.msk.msra.mxu3 %vm627_vm2, %v731_v55  ;;  %v733_v49 = vld [vmem:[%s1843_s4 + $0x8] sm:$0xff]  ;;  %v873_v53 = vld [vmem:[%s1844_s5 + $0xe0] sm:$0xff]  ;;  %v888_v54 = vld [vmem:[%s1844_s5 + $0x158] sm:$0xff] }
 0x12f   : > { %v904_v55 = vld [vmem:[%s1844_s5 + $0x1d8] sm:$0xff]  ;;  %v886_v62 = vld [vmem:[%s1844_s5 + $0x148] sm:$0xff]  ;;  %v853_v4 = vld [vmem:[%s1844_s5 + $0x40] sm:$0xff] }
 0x130   : > { %v902_v63 = vld [vmem:[%s1844_s5 + $0x1c8] sm:$0xff]  ;;  %v869_v5 = vld [vmem:[%s1844_s5 + $0xc0] sm:$0xff] }
 0x132   : > { %v713_v61 = vpop.permute.xlu0 %712 }
 0x133   : > { %v724_v0 = vmul.f32 %v713_v61, %v697_v57  ;;  %v725_v1 = vmul.f32 %v713_v61, %v698_v58  ;;  %v726_v2 = vmul.f32 %v713_v61, %v699_v59  ;;  %v727_v3 = vmul.f32 %v713_v61, %v700_v60  ;;  %v673_v6 = vpop.permute.xlu1 %672  ;;  %v872_v57 = vld [vmem:[%s1844_s5 + $0xd8] sm:$0xff]  ;;  %v887_v58 = vld [vmem:[%s1844_s5 + $0x150] sm:$0xff] }
 0x134   : > { %v683_v17 = vmul.f32 %v673_v6, %v656_v7  ;;  %v684_v18 = vmul.f32 %v673_v6, %v657_v8  ;;  %v685_v22 = vmul.f32 %v673_v6, %v658_v11  ;;  %v686_v23 = vmul.f32 %v673_v6, %v659_v12  ;;  %v903_v59 = vld [vmem:[%s1844_s5 + $0x1d0] sm:$0xff]  ;;  %v884_v6 = vld [vmem:[%s1844_s5 + $0x138] sm:$0xff] }
 0x135   : > { %764 = vmatpush.msra.mxu0 %v724_v0  ;;  %787 = vmatpush.msra.mxu1 %v725_v1  ;;  %v855_v60 = vld [vmem:[%s1844_s5 + $0x50] sm:$0xff]  ;;  %v854_v0 = vld [vmem:[%s1844_s5 + $0x48] sm:$0xff]  ;;  %v900_v7 = vld [vmem:[%s1844_s5 + $0x1b8] sm:$0xff] }
 0x136   : > { %810 = vmatpush.msra.mxu2 %v726_v2  ;;  %833 = vmatpush.msra.mxu3 %v727_v3  ;;  %v871_v61 = vld [vmem:[%s1844_s5 + $0xd0] sm:$0xff]  ;;  %v870_v1 = vld [vmem:[%s1844_s5 + $0xc8] sm:$0xff]  ;;  %v885_v2 = vld [vmem:[%s1844_s5 + $0x140] sm:$0xff] }
 0x137   : > { %765 = vmatpush.msra.mxu0 %v720_v9  ;;  %788 = vmatpush.msra.mxu1 %v721_v10  ;;  %v901_v3 = vld [vmem:[%s1844_s5 + $0x1c0] sm:$0xff]  ;;  %v852_v8 = vld [vmem:[%s1844_s5 + $0x38] sm:$0xff]  ;;  %v883_v10 = vld [vmem:[%s1844_s5 + $0x130] sm:$0xff] }
 0x138   : > { %811 = vmatpush.msra.mxu2 %v722_v13  ;;  %834 = vmatpush.msra.mxu3 %v723_v14  ;;  %v868_v9 = vld [vmem:[%s1844_s5 + $0xb8] sm:$0xff]  ;;  %v899_v11 = vld [vmem:[%s1844_s5 + $0x1b0] sm:$0xff]  ;;  %v882_v14 = vld [vmem:[%s1844_s5 + $0x128] sm:$0xff] }
 0x139   : > { %766 = vmatpush.msra.mxu0 %v683_v17  ;;  %789 = vmatpush.msra.mxu1 %v684_v18  ;;  %v851_v12 = vld [vmem:[%s1844_s5 + $0x30] sm:$0xff]  ;;  %v866_v17 = vld [vmem:[%s1844_s5 + $0xa8] sm:$0xff]  ;;  %v881_v18 = vld [vmem:[%s1844_s5 + $0x120] sm:$0xff] }
 0x13a   : > { %812 = vmatpush.msra.mxu2 %v685_v22  ;;  %835 = vmatpush.msra.mxu3 %v686_v23  ;;  %v867_v13 = vld [vmem:[%s1844_s5 + $0xb0] sm:$0xff]  ;;  %v880_v22 = vld [vmem:[%s1844_s5 + $0x118] sm:$0xff] }
 0x13b   : > { %767 = vmatpush.msra.mxu0 %v679_v26  ;;  %790 = vmatpush.msra.mxu1 %v680_v27  ;;  %v896_v23 = vld [vmem:[%s1844_s5 + $0x198] sm:$0xff]  ;;  %v879_v26 = vld [vmem:[%s1844_s5 + $0x110] sm:$0xff] }
 0x13c   : > { %813 = vmatpush.msra.mxu2 %v681_v30  ;;  %836 = vmatpush.msra.mxu3 %v682_v31  ;;  %v895_v27 = vld [vmem:[%s1844_s5 + $0x190] sm:$0xff]  ;;  %v877_v31 = vld [vmem:[%s1844_s5 + $0x100] sm:$0xff] }
 0x13d   : > { %768 = vmatpush.msra.mxu0 %v675_v32  ;;  %791 = vmatpush.msra.mxu1 %v676_v33  ;;  %v863_v30 = vld [vmem:[%s1844_s5 + $0x90] sm:$0xff]  ;;  %v894_v32 = vld [vmem:[%s1844_s5 + $0x188] sm:$0xff] }
 0x13e   : > { %814 = vmatpush.msra.mxu2 %v677_v34  ;;  %837 = vmatpush.msra.mxu3 %v678_v35  ;;  %v846_v33 = vld [vmem:[%s1844_s5 + $0x8] sm:$0xff]  ;;  %v893_v35 = vld [vmem:[%s1844_s5 + $0x180] sm:$0xff] }
 0x13f   : > { %1255 = vmatmul.msk.f32.vlgmr.msra.gmra.mxu2 %vm734_vm5, %v732_v36  ;;  %1258 = vmatmul.msk.f32.vlgmr.msra.gmra.mxu3 %vm734_vm5, %v732_v36  ;;  %v862_v34 = vld [vmem:[%s1844_s5 + $0x88] sm:$0xff] }
 0x140   : > { %1249 = vmatmul.msk.f32.vlgmr.msra.gmra.mxu0 %vm734_vm5, %v732_v36  ;;  %1252 = vmatmul.msk.f32.vlgmr.msra.gmra.mxu1 %vm734_vm5, %v732_v36  ;;  %v845_v36 = vld [vmem:[%s1844_s5] sm:$0xff] }
 0x141   : > { %955 = vmatpush.msrb.mxu2 %v892_v37  ;;  %978 = vmatpush.msrb.mxu3 %v908_v38  ;;  %v861_v37 = vld [vmem:[%s1844_s5 + $0x80] sm:$0xff] }
 0x142   : > { %909 = vmatpush.msrb.mxu0 %v860_v39  ;;  %932 = vmatpush.msrb.mxu1 %v876_v40  ;;  %v1304_v38 = vld [vmem:[%s1846_s7 + $0x1] ss:$0 sm:$0xff] }
 0x143   : > { %956 = vmatpush.msrb.mxu2 %v891_v41  ;;  %979 = vmatpush.msrb.mxu3 %v907_v42 }
 0x144   : > { %910 = vmatpush.msrb.mxu0 %v859_v43  ;;  %933 = vmatpush.msrb.mxu1 %v875_v44 }
 0x145   : > { %957 = vmatpush.msrb.mxu2 %v890_v45  ;;  %980 = vmatpush.msrb.mxu3 %v906_v46 }
 0x146   : > { %911 = vmatpush.msrb.mxu0 %v858_v47  ;;  %934 = vmatpush.msrb.mxu1 %v874_v48  ;;  %v1049_v47 = vld [vmem:[%s1850_s11 + $0x18] sm:$0xff]  ;;  %v1048_v48 = vld [vmem:[%s1850_s11 + $0x10] sm:$0xff] }
 0x147   : > { %1256 = vmatmul.msk.f32.gmra.mxu2 %vm734_vm5, %v733_v49  ;;  %1259 = vmatmul.msk.f32.gmra.mxu3 %vm734_vm5, %v733_v49 }
 0x148   : > { %1250 = vmatmul.msk.f32.gmra.mxu0 %vm734_vm5, %v733_v49  ;;  %1253 = vmatmul.msk.f32.gmra.mxu1 %vm734_vm5, %v733_v49  ;;  %v1047_v49 = vld [vmem:[%s1850_s11 + $0x8] sm:$0xff] }
 0x149   : > { %958 = vmatpush.msrb.mxu2 %v889_v50  ;;  %981 = vmatpush.msrb.mxu3 %v905_v51  ;;  %v1046_v50 = vld [vmem:[%s1850_s11] sm:$0xff] }
 0x14a   : > { %912 = vmatpush.msrb.mxu0 %v857_v52  ;;  %935 = vmatpush.msrb.mxu1 %v873_v53 }
 0x14b   : > { %959 = vmatpush.msrb.mxu2 %v888_v54  ;;  %982 = vmatpush.msrb.mxu3 %v904_v55 }
 0x14c   : > { %913 = vmatpush.msrb.mxu0 %v856_v56  ;;  %936 = vmatpush.msrb.mxu1 %v872_v57 }
 0x14d   : > { %960 = vmatpush.msrb.mxu2 %v887_v58  ;;  %983 = vmatpush.msrb.mxu3 %v903_v59 }
 0x14e   : > { %914 = vmatpush.msrb.mxu0 %v855_v60  ;;  %937 = vmatpush.msrb.mxu1 %v871_v61  ;;  %v1305_v61 = vld [vmem:[%s1845_s6] ss:$0 sm:$0xff] }
 0x14f   : > { %961 = vmatpush.msrb.mxu2 %v886_v62  ;;  %984 = vmatpush.msrb.mxu3 %v902_v63 }
 0x150   : > { %915 = vmatpush.msrb.mxu0 %v854_v0  ;;  %938 = vmatpush.msrb.mxu1 %v870_v1 }
 0x151   : > { %962 = vmatpush.msrb.mxu2 %v885_v2  ;;  %985 = vmatpush.msrb.mxu3 %v901_v3  ;;  %v1306_v2 = vld [vmem:[%s1845_s6 + $0x1] ss:$0 sm:$0xff] }
 0x152   : > { %916 = vmatpush.msrb.mxu0 %v853_v4  ;;  %939 = vmatpush.msrb.mxu1 %v869_v5 }
 0x153   : > { %963 = vmatpush.msrb.mxu2 %v884_v6  ;;  %986 = vmatpush.msrb.mxu3 %v900_v7 }
 0x154   : > { %917 = vmatpush.msrb.mxu0 %v852_v8  ;;  %940 = vmatpush.msrb.mxu1 %v868_v9  ;;  %v1015_v8 = vpop.permute.xlu0 %1014 }
 0x155   : > { %964 = vmatpush.msrb.mxu2 %v883_v10  ;;  %987 = vmatpush.msrb.mxu3 %v899_v11 }
 0x156   : > { %918 = vmatpush.msrb.mxu0 %v851_v12  ;;  %941 = vmatpush.msrb.mxu1 %v867_v13  ;;  %v1307_v12 = vld [vmem:[%s1851_s12] ss:$0 sm:$0xff] }
 0x157   : > { %965 = vmatpush.msrb.mxu2 %v882_v14  ;;  %988 = vmatpush.msrb.mxu3 %v898_v15 }
 0x158   : > { %919 = vmatpush.msrb.mxu0 %v850_v16  ;;  %942 = vmatpush.msrb.mxu1 %v866_v17 }
 0x159   : > { %966 = vmatpush.msrb.mxu2 %v881_v18  ;;  %989 = vmatpush.msrb.mxu3 %v897_v19 }
 0x15a   : > { %920 = vmatpush.msrb.mxu0 %v849_v20  ;;  %943 = vmatpush.msrb.mxu1 %v865_v21  ;;  %v1105_v21 = vld [vmem:[%s1849_s10] sm:$0xff] }
 0x15b   : > { %967 = vmatpush.msrb.mxu2 %v880_v22  ;;  %990 = vmatpush.msrb.mxu3 %v896_v23  ;;  %vm1106_vm8 = vcmp.gt.f32.partialorder %v1105_v21, 0.5 }
 0x15c   : > { %921 = vmatpush.msrb.mxu0 %v848_v24  ;;  %944 = vmatpush.msrb.mxu1 %v864_v25 }
 0x15d   : > { %968 = vmatpush.msrb.mxu2 %v879_v26  ;;  %991 = vmatpush.msrb.mxu3 %v895_v27 }
 0x15e   : > { %922 = vmatpush.msrb.mxu0 %v847_v29  ;;  %945 = vmatpush.msrb.mxu1 %v863_v30 }
 0x15f   : > { %969 = vmatpush.msrb.mxu2 %v878_v28  ;;  %992 = vmatpush.msrb.mxu3 %v894_v32 }
 0x160   : > { %923 = vmatpush.msrb.mxu0 %v846_v33  ;;  %946 = vmatpush.msrb.mxu1 %v862_v34 }
 0x161   : > { %970 = vmatpush.msrb.mxu2 %v877_v31  ;;  %993 = vmatpush.msrb.mxu3 %v893_v35 }
 0x162   : > { %924 = vmatpush.msrb.mxu0 %v845_v36  ;;  %947 = vmatpush.msrb.mxu1 %v861_v37 }
 0x163   : > { %1033 = vrot.lane.b32.xlu0 %v1304_v38, %s1340_s17 }
 0x164   : > { %1070 = vmatpush.msra.mxu0 %v1049_v47 }
 0x166   : > { %1071 = vmatpush.msra.mxu0 %v1048_v48  ;;  %v1308_v48 = vld [vmem:[%s1847_s8] ss:$0 sm:$0xff] }
 0x168   : > { %1072 = vmatpush.msra.mxu0 %v1047_v49 }
 0x16a   : > { %1073 = vmatpush.msra.mxu0 %v1046_v50 }
 0x1bd   : > { %v770_v39 = vpop.f32.mrf.mxu0  ;;  %v793_v40 = vpop.f32.mrf.mxu1 }
 0x1be   : > { %925 = vmatmul.f32.vlgmr.msrb.gmra.mxu0 %v770_v39  ;;  %948 = vmatmul.f32.vlgmr.msrb.gmra.mxu1 %v793_v40 }
 0x1c2   : > { %v816_v41 = vpop.f32.mrf.mxu2  ;;  %v839_v42 = vpop.f32.mrf.mxu3 }
 0x1c3   : > { %971 = vmatmul.f32.vlgmr.msrb.gmra.mxu2 %v816_v41  ;;  %994 = vmatmul.f32.vlgmr.msrb.gmra.mxu3 %v839_v42 }
 0x1c5   : > { %v773_v43 = vpop.f32.mrf.mxu0  ;;  %v796_v44 = vpop.f32.mrf.mxu1 }
 0x1c6   : > { %928 = vmatmul.f32.gmra.mxu0 %v773_v43  ;;  %951 = vmatmul.f32.gmra.mxu1 %v796_v44 }
 0x1ca   : > { %v819_v45 = vpop.f32.mrf.mxu2  ;;  %v842_v46 = vpop.f32.mrf.mxu3 }
 0x1cb   : > { %974 = vmatmul.f32.gmra.mxu2 %v819_v45  ;;  %997 = vmatmul.f32.gmra.mxu3 %v842_v46  ;;  %v1309_v45 = vld [vmem:[%s1846_s7] ss:$0 sm:$0xff] }
 0x1d5   : > { %v1034_v15 = vpop.permute.xlu0 %1033 }
 0x23b   : > { %v926_v51 = vpop.f32.mrf.mxu0  ;;  %v949_v52 = vpop.f32.mrf.mxu1 }
 0x23c   : > { %v950_v53 = vadd.f32 %v949_v52, %v926_v51  ;;  %v1160_v51 = vld [vmem:[%s1852_s13] sm:$0xff] }
 0x243   : > { %v929_v56 = vpop.f32.mrf.mxu0  ;;  %v952_v57 = vpop.f32.mrf.mxu1 }
 0x244   : > { %v953_v59 = vadd.f32 %v952_v57, %v929_v56 }
 0x246   : > { %v972_v54 = vpop.f32.mrf.mxu2  ;;  %v995_v55 = vpop.f32.mrf.mxu3 }
 0x247   : > { %v973_v58 = vadd.f32 %v972_v54, %v950_v53 }
 0x249   : > { %v996_v60 = vadd.f32 %v995_v55, %v973_v58  ;;  %v1166_v58 = vld [vmem:[%s1853_s14] sm:$0xff] }
 0x24b   : > { %v1003_v1 = vmul.f32 %v1305_v61, %v996_v60 }
 0x24d   : > { %v1007_v5 = vadd.f32 %v1306_v2, %v1003_v1 }
 0x24e   : > { %v975_v62 = vpop.f32.mrf.mxu2  ;;  %v998_v63 = vpop.f32.mrf.mxu3 }
 0x24f   : > { %v976_v0 = vadd.f32 %v975_v62, %v953_v59  ;;  %v1009_v9 = vmax.f32 %v1007_v5, 0.0 }
 0x251   : > { %v999_v3 = vadd.f32 %v998_v63, %v976_v0  ;;  %v1020_v46 = vmul.f32 %v1309_v45, %v1009_v9 }
 0x253   : > { %v1004_v4 = vmul.f32 %v1305_v61, %v999_v3  ;;  %v1022_v47 = vsel %vm1021_vm7, %v1020_v46, 0.0 }
 0x255   : > { %v1008_v6 = vadd.f32 %v1306_v2, %v1004_v4 }
 0x257   : > { %v1010_v7 = vmax.f32 %v1008_v6, 0.0 }
 0x259   : > { %v1017_v10 = vmul.f32 %v1015_v8, %v1010_v7 }
 0x25b   : > { %v1793_v11 = vsel %vm1021_vm7, %v1009_v9, %v1017_v10  ;;  %v1036_v16 = vmul.f32 %v1034_v15, %v1017_v10 }
 0x25c   : > { %1260 = vmatmul.msk.f32.vlgmr.msra.gmra.mxu0 %vm1054_vm6, %v1793_v11 }
 0x2d9   : > { %v1075_v13 = vpop.f32.mrf.mxu0 }
 0x2da   : > { %v1076_v14 = vadd.f32 %v1307_v12, %v1075_v13 }
 0x2dc   : > { %1129 = vrot.lane.b32.xlu2 %v1076_v14, %s1341_s23  ;;  %1079 = vrot.lane.b32.xlu1 %v1076_v14, %s1342_s24  ;;  %s1345_s23 = smov 48  }
 0x2e4   : > { %1038 = vrot.lane.b32.xlu2 %v1036_v16, %s1342_s24 }
 0x336   : > { %v1130_v17 = vpop.permute.xlu2 %1129 }
 0x337   : > { %1150 = vmatpush.msra.mxu2 %v1130_v17 }
 0x33e   : > { %v1039_v18 = vpop.permute.xlu2 %1038 }
 0x33f   : > { %v1041_v19 = vsel %vm1021_vm7, %v1039_v18, 0.0 }
 0x340   : > { %1042 = vadd.xlane.f32.xlu2 %v1041_v19 }
 0x34e   : > { %v1080_v20 = vpop.permute.xlu1 %1079 }
 0x34f   : > { %1261 = vmatpush.xpose.msk.msra.mxu1 %vm1021_vm7, %v1080_v20 }
 0x352   : > { %1262 = vmatmul.msk.f32.vlgmr.msra.gmra.mxu1 %vm1021_vm7, %v1076_v14 }
 0x3b3   : > { %v1043_v49 = vpop.xlane.xlu2 %1042 }
 0x3b4   : > { %v1044_v50 = vadd.f32 %v1308_v48, %v1043_v49 }
 0x3cf   : > { %v1102_v22 = vpop.f32.mrf.mxu1 }
 0x3d0   : > { %v1107_v23 = vsel %vm1106_vm8, -1e+30, %v1102_v22 }
 0x3d1   : > { %v1108_v24 = vmul.f32 0.25, %v1107_v23 }
 0x3d3   : > { %v1110_v25 = vsel %vm1109_vm9, %v1108_v24, -inf }
 0x3d4   : > { %v1111_v26 = vrot.slane %v1110_v25, 4 }
 0x3d6   : > { %v1112_v27 = vmax.f32 %v1110_v25, %v1111_v26 }
 0x3d8   : > { %v1113_v28 = vrot.slane %v1112_v27, 2 }
 0x3da   : > { %v1114_v29 = vmax.f32 %v1112_v27, %v1113_v28 }
 0x3dc   : > { %v1115_v30 = vrot.slane %v1114_v29, 1 }
 0x3de   : > { %v1116_v31 = vmax.f32 %v1114_v29, %v1115_v30 }
 0x3e0   : > { %v1117_v32 = vsub.f32 %v1108_v24, %v1116_v31 }
 0x3e2   : > { %v1118_v33 = vmul.f32 1.442695, %v1117_v32 }
 0x3e4   : > { %1310 = vpow2.f32 %v1118_v33 }
 0x3ea   : > { %v1311_v34 = vpop.eup %1310 }
 0x3eb   : > { %v1120_v35 = vsel %vm1109_vm9, %v1311_v34, 0.0 }
 0x3ec   : > { %v1121_v36 = vrot.slane %v1120_v35, 4 }
 0x3ee   : > { %v1122_v37 = vadd.f32 %v1121_v36, %v1120_v35 }
 0x3f0   : > { %v1123_v38 = vrot.slane %v1122_v37, 2 }
 0x3f2   : > { %v1124_v39 = vadd.f32 %v1123_v38, %v1122_v37 }
 0x3f4   : > { %v1125_v40 = vrot.slane %v1124_v39, 1 }
 0x3f6   : > { %v1126_v41 = vadd.f32 %v1125_v40, %v1124_v39 }
 0x3f8   : > { %1312 = vrcp.f32 %v1126_v41 }
 0x3fe   : > { %v1313_v42 = vpop.eup %1312 }
 0x3ff   : > { %v1128_v43 = vmul.f32 %v1313_v42, %v1311_v34 }
 0x401   : > { %1263 = vmatmul.msk.f32.vlgmr.msra.gmra.mxu2 %vm1109_vm9, %v1128_v43 }
 0x484   : > { %v1152_v44 = vpop.f32.mrf.mxu2 }
 0x485   : > { %1156 = vrot.lane.b32.xlu1 %v1152_v44, %s1343_s29 }
 0x4af   : > { %1023 = vadd.xlane.f32.xlu1 %v1022_v47 }
 0x4c8   : > { %1177 = vrot.lane.b32.xlu1 %v1044_v50, %s1344_s25 }
 0x4f7   : > { %v1157_v52 = vpop.permute.xlu1 %1156 }
 0x4f8   : > { %v1159_v53 = vsel %vm1054_vm6, %v1793_v11, %v1157_v52 }
 0x4f9   : > { %v1161_v54 = vmul.f32 %v1160_v51, %v1159_v53 }
 0x4fb   : > { %v1163_v55 = vsel %vm1162_vm10, %v1161_v54, 0.0 }
 0x4fc   : > { %1164 = vadd.xlane.f32.xlu0 %v1163_v55 }
 0x522   : > { %v1024_v56 = vpop.xlane.xlu1 %1023 }
 0x523   : > { %v1029_v57 = vadd.f32 %v1308_v48, %v1024_v56 }
 0x525   : > { %1173 = vrot.lane.b32.xlu0 %v1029_v57, %s1344_s25 }
 0x53a   : > { %v1178_v0 = vpop.permute.xlu1 %1177 }
 0x56f   : > { %v1165_v59 = vpop.xlane.xlu0 %1164 }
 0x570   : > { %v1167_v60 = vadd.f32 %v1166_v58, %v1165_v59 }
 0x572   : > { %1169 = vrot.lane.b32.xlu2 %v1167_v60, %s1345_s23 }
 0x597   : > { %v1174_v62 = vpop.permute.xlu0 %1173 }
 0x5cc   : > { %v1170_v61 = vpop.permute.xlu2 %1169 }
 0x5cd   : > { %v1180_v63 = vsel %vm1162_vm10, %v1159_v53, %v1170_v61 }
 0x5ce   : > { %v1182_v1 = vsel %vm1181_vm11, %v1180_v63, %v1174_v62 }
 0x5cf   : > { %v1184_v2 = vsel %vm1183_vm12, %v1182_v1, %v1178_v0 }
 0x5d0   : > { %v1186_v3 = vsel %vm1185_vm13, %v1184_v2, 0.0 }
 0x5d1   : > { %1187 = vst [vmem:[%s1854_s15] sm:$0xff] %v1186_v3 }
 0x5d2 PF: > { %s1862_s20 = sld [smem:[#allocation6_spill]]  ;;  %s1864_s18 = smov %s1332_s19 }
 0x5d3   : > { %s1863_s28 = sld [smem:[#allocation7_spill]] }
 0x5d8   : > { %p22_p10 = scmp.ge.s32.totalorder %s1862_s20, 4  }
 0x5d9   : > { %s1865_s19 = smov %s1863_s28 }
 0x5da   :  { %24 = sbr.rel (!%p22_p10) target bundleno = 2 (0x2), region = 203 }

</bundles_post_ra>
